<compile_context>
chip_gen: v5e
topology: v5e:2x2
jax: 0.10.0
libtpu: 0.0.40
codegen_flags: <defaults>
</compile_context>

<pallas_src>
import jax
import jax.numpy as jnp
from jax.experimental import pallas as pl
from jax.experimental.pallas import tpu as pltpu


LEVELS = 4  # ancestor path: [leaf, level2, level3, root]


def _round_up(n, m):
    return ((n + m - 1) // m) * m


def _cdiv(a, b):
    return -(-a // b)


# ---------------------------------------------------------------------------
# Pallas kernel: fused gather + input projection + bidirectional 4-step LSTM.
# ---------------------------------------------------------------------------
def _bilstm_kernel(ids_ref, gate_tbl_ref, w_hh_f_ref, w_hh_b_ref, out_ref):
    n_t = ids_ref.shape[0]
    v_pad = gate_tbl_ref.shape[0]
    E = w_hh_f_ref.shape[0]
    G4 = 4 * E                      # gates per direction per step
    G8 = 8 * E                      # per-level block: [fwd gates | bwd gates]

    # --- fused gather + x@W_ih + bias: one lane-dense MXU matmul ------------
    ids = ids_ref[...]                                            # (n_t, 1) int32
    lane = jax.lax.broadcasted_iota(jnp.int32, (n_t, v_pad), 1)
    one_hot = jnp.where(lane == ids, 1.0, 0.0).astype(jnp.bfloat16)
    gates_in = jnp.dot(one_hot, gate_tbl_ref[...],
                       preferred_element_type=jnp.float32)        # (n_t, LEVELS*G8) f32

    w_hh_f = w_hh_f_ref[...]                                      # (E, 4E) bf16
    w_hh_b = w_hh_b_ref[...]

    def gin_fwd(s):                 # forward step s consumes level s
        return gates_in[:, s * G8: s * G8 + G4]

    def gin_bwd(s):                 # backward step s consumes level LEVELS-1-s
        base = (LEVELS - 1 - s) * G8 + G4
        return gates_in[:, base: base + G4]

    def cell(gates, c):
        i = jax.nn.sigmoid(gates[:, 0:E])
        f = jax.nn.sigmoid(gates[:, E:2 * E])
        g = jnp.tanh(gates[:, 2 * E:3 * E])
        o = jax.nn.sigmoid(gates[:, 3 * E:4 * E])
        c = f * c + i * g
        return o * jnp.tanh(c), c

    def first_cell(gates):          # h = c = 0: skip f-gate and f*c term
        i = jax.nn.sigmoid(gates[:, 0:E])
        g = jnp.tanh(gates[:, 2 * E:3 * E])
        o = jax.nn.sigmoid(gates[:, 3 * E:4 * E])
        c = i * g
        return o * jnp.tanh(c), c

    # Step 0 of both directions: no recurrent matmul (zero initial state).
    h_f, c_f = first_cell(gin_fwd(0))
    h_b, c_b = first_cell(gin_bwd(0))

    # Steps 1..3, forward/backward interleaved (two independent chains).
    for s in range(1, LEVELS):
        rec_f = jnp.dot(h_f.astype(jnp.bfloat16), w_hh_f,
                        preferred_element_type=jnp.float32)
        rec_b = jnp.dot(h_b.astype(jnp.bfloat16), w_hh_b,
                        preferred_element_type=jnp.float32)
        h_f, c_f = cell(gin_fwd(s) + rec_f, c_f)
        h_b, c_b = cell(gin_bwd(s) + rec_b, c_b)

    # Single fused output block: [forward final h | backward final h].
    out_ref[:, 0:E] = h_f.astype(out_ref.dtype)
    out_ref[:, E:2 * E] = h_b.astype(out_ref.dtype)


def _tile_plan(n, max_tile=1024):
    """Choose (token tile, padded token count). Tiles are sublane-aligned; a
    single-tile workload of reasonable size is split in two so both v7x
    TensorCores can work on the 'parallel' grid axis."""
    n8 = _round_up(max(n, 8), 8)
    num_tiles = _cdiv(n8, max_tile)
    if num_tiles == 1 and n8 >= 256:
        num_tiles = 2
    n_t = _round_up(_cdiv(n8, num_tiles), 8)
    return n_t, n_t * num_tiles


def bilstm_final_hidden(ids_flat, gate_tbl, w_hh_f, w_hh_b, *, emb_dim,
                        max_tile=1024):
    """ids_flat: (N,) int32 token ids.  Returns (N, 2*emb_dim) f32 final hidden
    states [fwd | bwd] of the 4-step bidirectional LSTM over each token's
    ancestor path."""
    N = ids_flat.shape[0]
    n_t, n_pad = _tile_plan(N, max_tile)
    ids2d = jnp.pad(ids_flat.astype(jnp.int32),
                    (0, n_pad - N)).reshape(n_pad, 1)
    v_pad, gate_w = gate_tbl.shape

    out = pl.pallas_call(
        _bilstm_kernel,
        out_shape=jax.ShapeDtypeStruct((n_pad, 2 * emb_dim), jnp.float32),
        grid_spec=pltpu.PrefetchScalarGridSpec(
            num_scalar_prefetch=0,
            grid=(n_pad // n_t,),
            in_specs=[
                pl.BlockSpec((n_t, 1), lambda n: (n, 0)),                 # token ids
                pl.BlockSpec((v_pad, gate_w), lambda n: (0, 0)),          # fused gate table (bf16)
                pl.BlockSpec((emb_dim, 4 * emb_dim), lambda n: (0, 0)),   # W_hh fwd (bf16)
                pl.BlockSpec((emb_dim, 4 * emb_dim), lambda n: (0, 0)),   # W_hh bwd (bf16)
            ],
            out_specs=pl.BlockSpec((n_t, 2 * emb_dim), lambda n: (n, 0)),
        ),
        compiler_params=pltpu.CompilerParams(
            dimension_semantics=("parallel",),      # independent token tiles
            vmem_limit_bytes=32 * 1024 * 1024),
    )(ids2d, gate_tbl, w_hh_f, w_hh_b)
    return out[:N]


# ---------------------------------------------------------------------------
# Tree-embedding update + fused gate-table precompute (plain JAX, tiny).
# ---------------------------------------------------------------------------
def _update_tree_embedding(embed_table, leaf_to_l2, l2_to_l3, num_l2, num_l3):
    # TODO(synk): TreeNode.update_embedding() body is not in the spec; a parent
    # node's embedding is assumed to be the mean of its children's embeddings.
    V = embed_table.shape[0]
    leaf_emb = embed_table[1:]                    # real leaves (pad row excluded)
    leaf_parents = leaf_to_l2[1:]
    ones_leaf = jnp.ones((V - 1,), embed_table.dtype)
    l2_sum = jax.ops.segment_sum(leaf_emb, leaf_parents, num_segments=num_l2)
    l2_cnt = jax.ops.segment_sum(ones_leaf, leaf_parents, num_segments=num_l2)
    l2_emb = l2_sum / jnp.maximum(l2_cnt, 1.0)[:, None]

    ones_l2 = jnp.ones((num_l2,), embed_table.dtype)
    l3_sum = jax.ops.segment_sum(l2_emb, l2_to_l3, num_segments=num_l3)
    l3_cnt = jax.ops.segment_sum(ones_l2, l2_to_l3, num_segments=num_l3)
    l3_emb = l3_sum / jnp.maximum(l3_cnt, 1.0)[:, None]

    root_emb = jnp.mean(l3_emb, axis=0)
    return l2_emb, l3_emb, root_emb


def _build_fused_gate_table(embed_table, l2_emb, l3_emb, root_emb,
                            leaf_to_l2, l2_to_l3, lstm_params):
    """Per-leaf-id table of input-projected LSTM gates for every path level and
    both directions, biases folded in:
        level block t = [x_t @ W_ih_f + b_f | x_t @ W_ih_b + b_b]   (width 8E)
    Row id==0 (pad token) has zero path embeddings, so it reduces to the pure
    bias gates -- exactly nn.Embedding(padding_idx)+nn.LSTM semantics.
    Returns ((V_pad, LEVELS*8E) bf16 table, bf16 W_hh_f, bf16 W_hh_b)."""
    w_ih_f, w_hh_f, b_f, w_ih_b, w_hh_b, b_b = lstm_params
    V, E = embed_table.shape
    valid = (jnp.arange(V) != 0).astype(embed_table.dtype)[:, None]
    leaf = embed_table * valid                        # pad row forced to zero
    l2 = l2_emb[leaf_to_l2] * valid
    l3 = l3_emb[l2_to_l3[leaf_to_l2]] * valid
    root = jnp.broadcast_to(root_emb[None, :], (V, E)) * valid

    w_ih = jnp.concatenate([w_ih_f, w_ih_b], axis=1)  # (E, 8E)
    b = jnp.concatenate([b_f, b_b], axis=1)           # (1, 8E)
    blocks = [x @ w_ih + b for x in (leaf, l2, l3, root)]   # each (V, 8E)
    tbl = jnp.concatenate(blocks, axis=1)             # (V, LEVELS*8E)

    v_pad = _round_up(V, 128)                         # lane-align the one-hot contraction dim
    tbl = jnp.pad(tbl, ((0, v_pad - V), (0, 0)))
    return (tbl.astype(jnp.bfloat16),
            w_hh_f.astype(jnp.bfloat16),
            w_hh_b.astype(jnp.bfloat16))


def inputs_tree_embedding(input_src, embed_table, lstm_params,
                          leaf_to_l2, l2_to_l3, num_l2, num_l3):
    """Full forward of InputsTreeEmbedding: (B, T) token ids -> (B, T, 2E)."""
    B, T = input_src.shape
    E = embed_table.shape[1]
    l2_emb, l3_emb, root_emb = _update_tree_embedding(
        embed_table, leaf_to_l2, l2_to_l3, num_l2, num_l3)
    gate_tbl, w_hh_f_bf, w_hh_b_bf = _build_fused_gate_table(
        embed_table, l2_emb, l3_emb, root_emb, leaf_to_l2, l2_to_l3, lstm_params)
    ids = input_src.reshape(-1)
    leaf_embedding = bilstm_final_hidden(ids, gate_tbl, w_hh_f_bf, w_hh_b_bf,
                                         emb_dim=E)                # (B*T, 2E)
    return leaf_embedding.reshape(B, T, 2 * E)


# ---------------------------------------------------------------------------
# Pure-JAX f32 reference mirroring the PyTorch forward (BiLSTM via lax.scan).
# ---------------------------------------------------------------------------
def _build_path_embeddings(input_src, embed_table, l2_emb, l3_emb, root_emb,
                           leaf_to_l2, l2_to_l3):
    """(4, N, E) time-major path embeddings; zeros for pad tokens (id 0)."""
    E = embed_table.shape[1]
    ids = input_src.reshape(-1)
    valid = (ids != 0)[:, None].astype(embed_table.dtype)
    e1 = embed_table[ids]
    p2 = leaf_to_l2[ids]
    e2 = l2_emb[p2] * valid
    p3 = l2_to_l3[p2]
    e3 = l3_emb[p3] * valid
    e4 = jnp.broadcast_to(root_emb[None, :], (ids.shape[0], E)) * valid
    return jnp.stack([e1, e2, e3, e4], axis=0)


def _reference(input_src, embed_table, lstm_params, leaf_to_l2, l2_to_l3,
               num_l2, num_l3):
    w_ih_f, w_hh_f, b_f, w_ih_b, w_hh_b, b_b = lstm_params
    E = w_hh_f.shape[0]
    B, T = input_src.shape
    l2_emb, l3_emb, root_emb = _update_tree_embedding(
        embed_table, leaf_to_l2, l2_to_l3, num_l2, num_l3)
    x_paths = _build_path_embeddings(input_src, embed_table, l2_emb, l3_emb,
                                     root_emb, leaf_to_l2, l2_to_l3)
    N = x_paths.shape[1]

    def run(x_tm, w_ih, w_hh, b):
        def step(carry, xt):
            h, c = carry
            gates = xt @ w_ih + h @ w_hh + b
            i = jax.nn.sigmoid(gates[:, :E])
            f = jax.nn.sigmoid(gates[:, E:2 * E])
            g = jnp.tanh(gates[:, 2 * E:3 * E])
            o = jax.nn.sigmoid(gates[:, 3 * E:])
            c = f * c + i * g
            h = o * jnp.tanh(c)
            return (h, c), None
        init = (jnp.zeros((N, E), jnp.float32), jnp.zeros((N, E), jnp.float32))
        (h, _), _ = jax.lax.scan(step, init, x_tm)
        return h

    hf = run(x_paths, w_ih_f, w_hh_f, b_f)
    hb = run(x_paths[::-1], w_ih_b, w_hh_b, b_b)
    return jnp.concatenate([hf, hb], axis=-1).reshape(B, T, -1)


if __name__ == "__main__":
    B, T = 2, 8            # input_src shape (batch, seq)
    V = 33                 # vocab size incl. pad token at index 0
    E = 32                 # emb_dim
    NUM_L2, NUM_L3 = 8, 4  # deterministic tree: 4 leaves/level2, 2 level2/level3

    key = jax.random.PRNGKey(0)
    ks = jax.random.split(key, 8)

    # Deterministic tree structure: leaf i (1..32) -> level2 (i-1)//4 -> level3 //2 -> root.
    leaf_to_l2 = jnp.maximum(jnp.arange(V) - 1, 0) // 4           # (V,)
    l2_to_l3 = jnp.arange(NUM_L2) // 2                            # (NUM_L2,)

    # Embedding table; row 0 is the padding_idx row (zero, like nn.Embedding).
    embed_table = jax.random.normal(ks[0], (V, E), jnp.float32)
    embed_table = embed_table.at[0].set(0.0)

    # Token ids, with at least one pad token to exercise the pad path.
    input_src = jax.random.randint(ks[1], (B, T), 0, V)
    input_src = input_src.at[0, 0].set(0)

    # Synthetic BiLSTM params stored (in_features, 4*hidden) so the math is
    # x @ W + b; the two nn.LSTM biases are pre-fused into one per direction.
    scale = 0.1
    lstm_params = (
        scale * jax.random.normal(ks[2], (E, 4 * E), jnp.float32),  # W_ih fwd
        scale * jax.random.normal(ks[3], (E, 4 * E), jnp.float32),  # W_hh fwd
        scale * jax.random.normal(ks[4], (1, 4 * E), jnp.float32),  # b fwd (fused)
        scale * jax.random.normal(ks[5], (E, 4 * E), jnp.float32),  # W_ih bwd
        scale * jax.random.normal(ks[6], (E, 4 * E), jnp.float32),  # W_hh bwd
        scale * jax.random.normal(ks[7], (1, 4 * E), jnp.float32),  # b bwd (fused)
    )

    out = inputs_tree_embedding(input_src, embed_table, lstm_params,
                                leaf_to_l2, l2_to_l3, NUM_L2, NUM_L3)
    jax.block_until_ready(out)

    ref = _reference(input_src, embed_table, lstm_params,
                     leaf_to_l2, l2_to_l3, NUM_L2, NUM_L3)
    assert out.shape == (B, T, 2 * E)
    # MXU operands are bf16 in the kernel (f32 reference) -> loosened tolerance.
    assert jnp.allclose(out, ref, atol=2e-2, rtol=2e-2), float(
        jnp.max(jnp.abs(out - ref)))

    print("KERNEL_OK")
</pallas_src>

<mosaic_0001>
module attributes {stable_mosaic.version = 11 : i64} {
  func.func @_bilstm_kernel(%arg0: i32, %arg1: memref<16x1xi32, #tpu.memory_space<vmem>>, %arg2: memref<128x1024xbf16, #tpu.memory_space<vmem>>, %arg3: memref<32x128xbf16, #tpu.memory_space<vmem>>, %arg4: memref<32x128xbf16, #tpu.memory_space<vmem>>, %arg5: memref<16x64xf32, #tpu.memory_space<vmem>>) attributes {dimension_semantics = [#tpu.dimension_semantics<parallel>], iteration_bounds = array<i64: 1>, scalar_prefetch = 0 : i64, scratch_operands = 0 : i64, tpu.core_type = #tpu.core_type<tc>, window_params = [{transform_indices = @transform_0, window_bounds = array<i64: 16, 1>}, {pipeline_mode = #tpu.pipeline_mode<synchronous>, transform_indices = @transform_1, window_bounds = array<i64: 128, 1024>}, {pipeline_mode = #tpu.pipeline_mode<synchronous>, transform_indices = @transform_2, window_bounds = array<i64: 32, 128>}, {pipeline_mode = #tpu.pipeline_mode<synchronous>, transform_indices = @transform_3, window_bounds = array<i64: 32, 128>}, {transform_indices = @transform_4, window_bounds = array<i64: 16, 64>}]} {
    %c0 = arith.constant 0 : index
    %c0_0 = arith.constant 0 : index
    %0 = vector.load %arg1[%c0, %c0_0] : memref<16x1xi32, #tpu.memory_space<vmem>>, vector<16x1xi32>
    %1 = tpu.iota {dimensions = array<i32: 1>} : vector<16x128xi32>
    %2 = vector.broadcast %0 : vector<16x1xi32> to vector<16x128xi32>
    %3 = arith.cmpi eq, %1, %2 : vector<16x128xi32>
    %cst = arith.constant 1.000000e+00 : f32
    %cst_1 = arith.constant 0.000000e+00 : f32
    %4 = vector.broadcast %cst : f32 to vector<16x128xf32>
    %5 = vector.broadcast %cst_1 : f32 to vector<16x128xf32>
    %6 = arith.select %3, %4, %5 : vector<16x128xi1>, vector<16x128xf32>
    %7 = arith.truncf %6 : vector<16x128xf32> to vector<16x128xbf16>
    %c0_2 = arith.constant 0 : index
    %c0_3 = arith.constant 0 : index
    %8 = vector.load %arg2[%c0_2, %c0_3] : memref<128x1024xbf16, #tpu.memory_space<vmem>>, vector<128x1024xbf16>
    %cst_4 = arith.constant dense<0.000000e+00> : vector<16x1024xf32>
    %9 = tpu.matmul %7, %8, %cst_4 {dimension_numbers = #tpu.dot_dimension_numbers<[1], [0], [0], [1], [0, 0, 1, 1], [], []>} : vector<16x128xbf16>, vector<128x1024xbf16>, vector<16x1024xf32> -> vector<16x1024xf32>
    %c0_5 = arith.constant 0 : index
    %c0_6 = arith.constant 0 : index
    %10 = vector.load %arg3[%c0_5, %c0_6] : memref<32x128xbf16, #tpu.memory_space<vmem>>, vector<32x128xbf16>
    %c0_7 = arith.constant 0 : index
    %c0_8 = arith.constant 0 : index
    %11 = vector.load %arg4[%c0_7, %c0_8] : memref<32x128xbf16, #tpu.memory_space<vmem>>, vector<32x128xbf16>
    %12 = vector.extract_strided_slice %9 {offsets = [0, 0], sizes = [16, 128], strides = [1, 1]} : vector<16x1024xf32> to vector<16x128xf32>
    %13 = vector.extract_strided_slice %12 {offsets = [0, 0], sizes = [16, 32], strides = [1, 1]} : vector<16x128xf32> to vector<16x32xf32>
    %14 = arith.negf %13 : vector<16x32xf32>
    %15 = math.exp %14 : vector<16x32xf32>
    %cst_9 = arith.constant 1.000000e+00 : f32
    %16 = vector.broadcast %cst_9 : f32 to vector<16x32xf32>
    %17 = arith.addf %16, %15 : vector<16x32xf32>
    %18 = arith.divf %16, %17 : vector<16x32xf32>
    %19 = vector.extract_strided_slice %12 {offsets = [0, 64], sizes = [16, 32], strides = [1, 1]} : vector<16x128xf32> to vector<16x32xf32>
    %20 = math.tanh %19 : vector<16x32xf32>
    %21 = vector.extract_strided_slice %12 {offsets = [0, 96], sizes = [16, 32], strides = [1, 1]} : vector<16x128xf32> to vector<16x32xf32>
    %22 = arith.negf %21 : vector<16x32xf32>
    %23 = math.exp %22 : vector<16x32xf32>
    %cst_10 = arith.constant 1.000000e+00 : f32
    %24 = vector.broadcast %cst_10 : f32 to vector<16x32xf32>
    %25 = arith.addf %24, %23 : vector<16x32xf32>
    %26 = arith.divf %24, %25 : vector<16x32xf32>
    %27 = arith.mulf %18, %20 : vector<16x32xf32>
    %28 = math.tanh %27 : vector<16x32xf32>
    %29 = arith.mulf %26, %28 : vector<16x32xf32>
    %30 = vector.extract_strided_slice %9 {offsets = [0, 896], sizes = [16, 128], strides = [1, 1]} : vector<16x1024xf32> to vector<16x128xf32>
    %31 = vector.extract_strided_slice %30 {offsets = [0, 0], sizes = [16, 32], strides = [1, 1]} : vector<16x128xf32> to vector<16x32xf32>
    %32 = arith.negf %31 : vector<16x32xf32>
    %33 = math.exp %32 : vector<16x32xf32>
    %cst_11 = arith.constant 1.000000e+00 : f32
    %34 = vector.broadcast %cst_11 : f32 to vector<16x32xf32>
    %35 = arith.addf %34, %33 : vector<16x32xf32>
    %36 = arith.divf %34, %35 : vector<16x32xf32>
    %37 = vector.extract_strided_slice %30 {offsets = [0, 64], sizes = [16, 32], strides = [1, 1]} : vector<16x128xf32> to vector<16x32xf32>
    %38 = math.tanh %37 : vector<16x32xf32>
    %39 = vector.extract_strided_slice %30 {offsets = [0, 96], sizes = [16, 32], strides = [1, 1]} : vector<16x128xf32> to vector<16x32xf32>
    %40 = arith.negf %39 : vector<16x32xf32>
    %41 = math.exp %40 : vector<16x32xf32>
    %cst_12 = arith.constant 1.000000e+00 : f32
    %42 = vector.broadcast %cst_12 : f32 to vector<16x32xf32>
    %43 = arith.addf %42, %41 : vector<16x32xf32>
    %44 = arith.divf %42, %43 : vector<16x32xf32>
    %45 = arith.mulf %36, %38 : vector<16x32xf32>
    %46 = math.tanh %45 : vector<16x32xf32>
    %47 = arith.mulf %44, %46 : vector<16x32xf32>
    %48 = arith.truncf %29 : vector<16x32xf32> to vector<16x32xbf16>
    %cst_13 = arith.constant dense<0.000000e+00> : vector<16x128xf32>
    %49 = tpu.matmul %48, %10, %cst_13 {dimension_numbers = #tpu.dot_dimension_numbers<[1], [0], [0], [1], [0, 0, 1, 1], [], []>} : vector<16x32xbf16>, vector<32x128xbf16>, vector<16x128xf32> -> vector<16x128xf32>
    %50 = arith.truncf %47 : vector<16x32xf32> to vector<16x32xbf16>
    %cst_14 = arith.constant dense<0.000000e+00> : vector<16x128xf32>
    %51 = tpu.matmul %50, %11, %cst_14 {dimension_numbers = #tpu.dot_dimension_numbers<[1], [0], [0], [1], [0, 0, 1, 1], [], []>} : vector<16x32xbf16>, vector<32x128xbf16>, vector<16x128xf32> -> vector<16x128xf32>
    %52 = vector.extract_strided_slice %9 {offsets = [0, 256], sizes = [16, 128], strides = [1, 1]} : vector<16x1024xf32> to vector<16x128xf32>
    %53 = arith.addf %52, %49 : vector<16x128xf32>
    %54 = vector.extract_strided_slice %53 {offsets = [0, 0], sizes = [16, 32], strides = [1, 1]} : vector<16x128xf32> to vector<16x32xf32>
    %55 = arith.negf %54 : vector<16x32xf32>
    %56 = math.exp %55 : vector<16x32xf32>
    %cst_15 = arith.constant 1.000000e+00 : f32
    %57 = vector.broadcast %cst_15 : f32 to vector<16x32xf32>
    %58 = arith.addf %57, %56 : vector<16x32xf32>
    %59 = arith.divf %57, %58 : vector<16x32xf32>
    %60 = vector.extract_strided_slice %53 {offsets = [0, 32], sizes = [16, 32], strides = [1, 1]} : vector<16x128xf32> to vector<16x32xf32>
    %61 = arith.negf %60 : vector<16x32xf32>
    %62 = math.exp %61 : vector<16x32xf32>
    %cst_16 = arith.constant 1.000000e+00 : f32
    %63 = vector.broadcast %cst_16 : f32 to vector<16x32xf32>
    %64 = arith.addf %63, %62 : vector<16x32xf32>
    %65 = arith.divf %63, %64 : vector<16x32xf32>
    %66 = vector.extract_strided_slice %53 {offsets = [0, 64], sizes = [16, 32], strides = [1, 1]} : vector<16x128xf32> to vector<16x32xf32>
    %67 = math.tanh %66 : vector<16x32xf32>
    %68 = vector.extract_strided_slice %53 {offsets = [0, 96], sizes = [16, 32], strides = [1, 1]} : vector<16x128xf32> to vector<16x32xf32>
    %69 = arith.negf %68 : vector<16x32xf32>
    %70 = math.exp %69 : vector<16x32xf32>
    %cst_17 = arith.constant 1.000000e+00 : f32
    %71 = vector.broadcast %cst_17 : f32 to vector<16x32xf32>
    %72 = arith.addf %71, %70 : vector<16x32xf32>
    %73 = arith.divf %71, %72 : vector<16x32xf32>
    %74 = arith.mulf %65, %27 : vector<16x32xf32>
    %75 = arith.mulf %59, %67 : vector<16x32xf32>
    %76 = arith.addf %74, %75 : vector<16x32xf32>
    %77 = math.tanh %76 : vector<16x32xf32>
    %78 = arith.mulf %73, %77 : vector<16x32xf32>
    %79 = vector.extract_strided_slice %9 {offsets = [0, 640], sizes = [16, 128], strides = [1, 1]} : vector<16x1024xf32> to vector<16x128xf32>
    %80 = arith.addf %79, %51 : vector<16x128xf32>
    %81 = vector.extract_strided_slice %80 {offsets = [0, 0], sizes = [16, 32], strides = [1, 1]} : vector<16x128xf32> to vector<16x32xf32>
    %82 = arith.negf %81 : vector<16x32xf32>
    %83 = math.exp %82 : vector<16x32xf32>
    %cst_18 = arith.constant 1.000000e+00 : f32
    %84 = vector.broadcast %cst_18 : f32 to vector<16x32xf32>
    %85 = arith.addf %84, %83 : vector<16x32xf32>
    %86 = arith.divf %84, %85 : vector<16x32xf32>
    %87 = vector.extract_strided_slice %80 {offsets = [0, 32], sizes = [16, 32], strides = [1, 1]} : vector<16x128xf32> to vector<16x32xf32>
    %88 = arith.negf %87 : vector<16x32xf32>
    %89 = math.exp %88 : vector<16x32xf32>
    %cst_19 = arith.constant 1.000000e+00 : f32
    %90 = vector.broadcast %cst_19 : f32 to vector<16x32xf32>
    %91 = arith.addf %90, %89 : vector<16x32xf32>
    %92 = arith.divf %90, %91 : vector<16x32xf32>
    %93 = vector.extract_strided_slice %80 {offsets = [0, 64], sizes = [16, 32], strides = [1, 1]} : vector<16x128xf32> to vector<16x32xf32>
    %94 = math.tanh %93 : vector<16x32xf32>
    %95 = vector.extract_strided_slice %80 {offsets = [0, 96], sizes = [16, 32], strides = [1, 1]} : vector<16x128xf32> to vector<16x32xf32>
    %96 = arith.negf %95 : vector<16x32xf32>
    %97 = math.exp %96 : vector<16x32xf32>
    %cst_20 = arith.constant 1.000000e+00 : f32
    %98 = vector.broadcast %cst_20 : f32 to vector<16x32xf32>
    %99 = arith.addf %98, %97 : vector<16x32xf32>
    %100 = arith.divf %98, %99 : vector<16x32xf32>
    %101 = arith.mulf %92, %45 : vector<16x32xf32>
    %102 = arith.mulf %86, %94 : vector<16x32xf32>
    %103 = arith.addf %101, %102 : vector<16x32xf32>
    %104 = math.tanh %103 : vector<16x32xf32>
    %105 = arith.mulf %100, %104 : vector<16x32xf32>
    %106 = arith.truncf %78 : vector<16x32xf32> to vector<16x32xbf16>
    %cst_21 = arith.constant dense<0.000000e+00> : vector<16x128xf32>
    %107 = tpu.matmul %106, %10, %cst_21 {dimension_numbers = #tpu.dot_dimension_numbers<[1], [0], [0], [1], [0, 0, 1, 1], [], []>} : vector<16x32xbf16>, vector<32x128xbf16>, vector<16x128xf32> -> vector<16x128xf32>
    %108 = arith.truncf %105 : vector<16x32xf32> to vector<16x32xbf16>
    %cst_22 = arith.constant dense<0.000000e+00> : vector<16x128xf32>
    %109 = tpu.matmul %108, %11, %cst_22 {dimension_numbers = #tpu.dot_dimension_numbers<[1], [0], [0], [1], [0, 0, 1, 1], [], []>} : vector<16x32xbf16>, vector<32x128xbf16>, vector<16x128xf32> -> vector<16x128xf32>
    %110 = vector.extract_strided_slice %9 {offsets = [0, 512], sizes = [16, 128], strides = [1, 1]} : vector<16x1024xf32> to vector<16x128xf32>
    %111 = arith.addf %110, %107 : vector<16x128xf32>
    %112 = vector.extract_strided_slice %111 {offsets = [0, 0], sizes = [16, 32], strides = [1, 1]} : vector<16x128xf32> to vector<16x32xf32>
    %113 = arith.negf %112 : vector<16x32xf32>
    %114 = math.exp %113 : vector<16x32xf32>
    %cst_23 = arith.constant 1.000000e+00 : f32
    %115 = vector.broadcast %cst_23 : f32 to vector<16x32xf32>
    %116 = arith.addf %115, %114 : vector<16x32xf32>
    %117 = arith.divf %115, %116 : vector<16x32xf32>
    %118 = vector.extract_strided_slice %111 {offsets = [0, 32], sizes = [16, 32], strides = [1, 1]} : vector<16x128xf32> to vector<16x32xf32>
    %119 = arith.negf %118 : vector<16x32xf32>
    %120 = math.exp %119 : vector<16x32xf32>
    %cst_24 = arith.constant 1.000000e+00 : f32
    %121 = vector.broadcast %cst_24 : f32 to vector<16x32xf32>
    %122 = arith.addf %121, %120 : vector<16x32xf32>
    %123 = arith.divf %121, %122 : vector<16x32xf32>
    %124 = vector.extract_strided_slice %111 {offsets = [0, 64], sizes = [16, 32], strides = [1, 1]} : vector<16x128xf32> to vector<16x32xf32>
    %125 = math.tanh %124 : vector<16x32xf32>
    %126 = vector.extract_strided_slice %111 {offsets = [0, 96], sizes = [16, 32], strides = [1, 1]} : vector<16x128xf32> to vector<16x32xf32>
    %127 = arith.negf %126 : vector<16x32xf32>
    %128 = math.exp %127 : vector<16x32xf32>
    %cst_25 = arith.constant 1.000000e+00 : f32
    %129 = vector.broadcast %cst_25 : f32 to vector<16x32xf32>
    %130 = arith.addf %129, %128 : vector<16x32xf32>
    %131 = arith.divf %129, %130 : vector<16x32xf32>
    %132 = arith.mulf %123, %76 : vector<16x32xf32>
    %133 = arith.mulf %117, %125 : vector<16x32xf32>
    %134 = arith.addf %132, %133 : vector<16x32xf32>
    %135 = math.tanh %134 : vector<16x32xf32>
    %136 = arith.mulf %131, %135 : vector<16x32xf32>
    %137 = vector.extract_strided_slice %9 {offsets = [0, 384], sizes = [16, 128], strides = [1, 1]} : vector<16x1024xf32> to vector<16x128xf32>
    %138 = arith.addf %137, %109 : vector<16x128xf32>
    %139 = vector.extract_strided_slice %138 {offsets = [0, 0], sizes = [16, 32], strides = [1, 1]} : vector<16x128xf32> to vector<16x32xf32>
    %140 = arith.negf %139 : vector<16x32xf32>
    %141 = math.exp %140 : vector<16x32xf32>
    %cst_26 = arith.constant 1.000000e+00 : f32
    %142 = vector.broadcast %cst_26 : f32 to vector<16x32xf32>
    %143 = arith.addf %142, %141 : vector<16x32xf32>
    %144 = arith.divf %142, %143 : vector<16x32xf32>
    %145 = vector.extract_strided_slice %138 {offsets = [0, 32], sizes = [16, 32], strides = [1, 1]} : vector<16x128xf32> to vector<16x32xf32>
    %146 = arith.negf %145 : vector<16x32xf32>
    %147 = math.exp %146 : vector<16x32xf32>
    %cst_27 = arith.constant 1.000000e+00 : f32
    %148 = vector.broadcast %cst_27 : f32 to vector<16x32xf32>
    %149 = arith.addf %148, %147 : vector<16x32xf32>
    %150 = arith.divf %148, %149 : vector<16x32xf32>
    %151 = vector.extract_strided_slice %138 {offsets = [0, 64], sizes = [16, 32], strides = [1, 1]} : vector<16x128xf32> to vector<16x32xf32>
    %152 = math.tanh %151 : vector<16x32xf32>
    %153 = vector.extract_strided_slice %138 {offsets = [0, 96], sizes = [16, 32], strides = [1, 1]} : vector<16x128xf32> to vector<16x32xf32>
    %154 = arith.negf %153 : vector<16x32xf32>
    %155 = math.exp %154 : vector<16x32xf32>
    %cst_28 = arith.constant 1.000000e+00 : f32
    %156 = vector.broadcast %cst_28 : f32 to vector<16x32xf32>
    %157 = arith.addf %156, %155 : vector<16x32xf32>
    %158 = arith.divf %156, %157 : vector<16x32xf32>
    %159 = arith.mulf %150, %103 : vector<16x32xf32>
    %160 = arith.mulf %144, %152 : vector<16x32xf32>
    %161 = arith.addf %159, %160 : vector<16x32xf32>
    %162 = math.tanh %161 : vector<16x32xf32>
    %163 = arith.mulf %158, %162 : vector<16x32xf32>
    %164 = arith.truncf %136 : vector<16x32xf32> to vector<16x32xbf16>
    %cst_29 = arith.constant dense<0.000000e+00> : vector<16x128xf32>
    %165 = tpu.matmul %164, %10, %cst_29 {dimension_numbers = #tpu.dot_dimension_numbers<[1], [0], [0], [1], [0, 0, 1, 1], [], []>} : vector<16x32xbf16>, vector<32x128xbf16>, vector<16x128xf32> -> vector<16x128xf32>
    %166 = arith.truncf %163 : vector<16x32xf32> to vector<16x32xbf16>
    %cst_30 = arith.constant dense<0.000000e+00> : vector<16x128xf32>
    %167 = tpu.matmul %166, %11, %cst_30 {dimension_numbers = #tpu.dot_dimension_numbers<[1], [0], [0], [1], [0, 0, 1, 1], [], []>} : vector<16x32xbf16>, vector<32x128xbf16>, vector<16x128xf32> -> vector<16x128xf32>
    %168 = vector.extract_strided_slice %9 {offsets = [0, 768], sizes = [16, 128], strides = [1, 1]} : vector<16x1024xf32> to vector<16x128xf32>
    %169 = arith.addf %168, %165 : vector<16x128xf32>
    %170 = vector.extract_strided_slice %169 {offsets = [0, 0], sizes = [16, 32], strides = [1, 1]} : vector<16x128xf32> to vector<16x32xf32>
    %171 = arith.negf %170 : vector<16x32xf32>
    %172 = math.exp %171 : vector<16x32xf32>
    %cst_31 = arith.constant 1.000000e+00 : f32
    %173 = vector.broadcast %cst_31 : f32 to vector<16x32xf32>
    %174 = arith.addf %173, %172 : vector<16x32xf32>
    %175 = arith.divf %173, %174 : vector<16x32xf32>
    %176 = vector.extract_strided_slice %169 {offsets = [0, 32], sizes = [16, 32], strides = [1, 1]} : vector<16x128xf32> to vector<16x32xf32>
    %177 = arith.negf %176 : vector<16x32xf32>
    %178 = math.exp %177 : vector<16x32xf32>
    %cst_32 = arith.constant 1.000000e+00 : f32
    %179 = vector.broadcast %cst_32 : f32 to vector<16x32xf32>
    %180 = arith.addf %179, %178 : vector<16x32xf32>
    %181 = arith.divf %179, %180 : vector<16x32xf32>
    %182 = vector.extract_strided_slice %169 {offsets = [0, 64], sizes = [16, 32], strides = [1, 1]} : vector<16x128xf32> to vector<16x32xf32>
    %183 = math.tanh %182 : vector<16x32xf32>
    %184 = vector.extract_strided_slice %169 {offsets = [0, 96], sizes = [16, 32], strides = [1, 1]} : vector<16x128xf32> to vector<16x32xf32>
    %185 = arith.negf %184 : vector<16x32xf32>
    %186 = math.exp %185 : vector<16x32xf32>
    %cst_33 = arith.constant 1.000000e+00 : f32
    %187 = vector.broadcast %cst_33 : f32 to vector<16x32xf32>
    %188 = arith.addf %187, %186 : vector<16x32xf32>
    %189 = arith.divf %187, %188 : vector<16x32xf32>
    %190 = arith.mulf %181, %134 : vector<16x32xf32>
    %191 = arith.mulf %175, %183 : vector<16x32xf32>
    %192 = arith.addf %190, %191 : vector<16x32xf32>
    %193 = math.tanh %192 : vector<16x32xf32>
    %194 = arith.mulf %189, %193 : vector<16x32xf32>
    %195 = vector.extract_strided_slice %9 {offsets = [0, 128], sizes = [16, 128], strides = [1, 1]} : vector<16x1024xf32> to vector<16x128xf32>
    %196 = arith.addf %195, %167 : vector<16x128xf32>
    %197 = vector.extract_strided_slice %196 {offsets = [0, 0], sizes = [16, 32], strides = [1, 1]} : vector<16x128xf32> to vector<16x32xf32>
    %198 = arith.negf %197 : vector<16x32xf32>
    %199 = math.exp %198 : vector<16x32xf32>
    %cst_34 = arith.constant 1.000000e+00 : f32
    %200 = vector.broadcast %cst_34 : f32 to vector<16x32xf32>
    %201 = arith.addf %200, %199 : vector<16x32xf32>
    %202 = arith.divf %200, %201 : vector<16x32xf32>
    %203 = vector.extract_strided_slice %196 {offsets = [0, 32], sizes = [16, 32], strides = [1, 1]} : vector<16x128xf32> to vector<16x32xf32>
    %204 = arith.negf %203 : vector<16x32xf32>
    %205 = math.exp %204 : vector<16x32xf32>
    %cst_35 = arith.constant 1.000000e+00 : f32
    %206 = vector.broadcast %cst_35 : f32 to vector<16x32xf32>
    %207 = arith.addf %206, %205 : vector<16x32xf32>
    %208 = arith.divf %206, %207 : vector<16x32xf32>
    %209 = vector.extract_strided_slice %196 {offsets = [0, 64], sizes = [16, 32], strides = [1, 1]} : vector<16x128xf32> to vector<16x32xf32>
    %210 = math.tanh %209 : vector<16x32xf32>
    %211 = vector.extract_strided_slice %196 {offsets = [0, 96], sizes = [16, 32], strides = [1, 1]} : vector<16x128xf32> to vector<16x32xf32>
    %212 = arith.negf %211 : vector<16x32xf32>
    %213 = math.exp %212 : vector<16x32xf32>
    %cst_36 = arith.constant 1.000000e+00 : f32
    %214 = vector.broadcast %cst_36 : f32 to vector<16x32xf32>
    %215 = arith.addf %214, %213 : vector<16x32xf32>
    %216 = arith.divf %214, %215 : vector<16x32xf32>
    %217 = arith.mulf %208, %161 : vector<16x32xf32>
    %218 = arith.mulf %202, %210 : vector<16x32xf32>
    %219 = arith.addf %217, %218 : vector<16x32xf32>
    %220 = math.tanh %219 : vector<16x32xf32>
    %221 = arith.mulf %216, %220 : vector<16x32xf32>
    %c0_37 = arith.constant 0 : index
    %c0_38 = arith.constant 0 : index
    %222 = vector.load %arg5[%c0_37, %c0_38] : memref<16x64xf32, #tpu.memory_space<vmem>>, vector<16x32xf32>
    tpu.vector_store %arg5[%c0_37, %c0_38], %194 {strides = array<i32>} : memref<16x64xf32, #tpu.memory_space<vmem>>, vector<16x32xf32>,
    %c0_39 = arith.constant 0 : index
    %c32 = arith.constant 32 : index
    %223 = vector.load %arg5[%c0_39, %c32] : memref<16x64xf32, #tpu.memory_space<vmem>>, vector<16x32xf32>
    tpu.vector_store %arg5[%c0_39, %c32], %221 {strides = array<i32>} : memref<16x64xf32, #tpu.memory_space<vmem>>, vector<16x32xf32>,
    return
  }
  func.func @transform_0(%arg0: i32) -> (i32, i32) {
    %c0_i32 = arith.constant 0 : i32
    %c0_i32_0 = arith.constant 0 : i32
    return %arg0, %c0_i32 : i32, i32
  }
  func.func @transform_1(%arg0: i32) -> (i32, i32) {
    %c0_i32 = arith.constant 0 : i32
    %c0_i32_0 = arith.constant 0 : i32
    %c0_i32_1 = arith.constant 0 : i32
    return %c0_i32, %c0_i32_0 : i32, i32
  }
  func.func @transform_2(%arg0: i32) -> (i32, i32) {
    %c0_i32 = arith.constant 0 : i32
    %c0_i32_0 = arith.constant 0 : i32
    %c0_i32_1 = arith.constant 0 : i32
    return %c0_i32, %c0_i32_0 : i32, i32
  }
  func.func @transform_3(%arg0: i32) -> (i32, i32) {
    %c0_i32 = arith.constant 0 : i32
    %c0_i32_0 = arith.constant 0 : i32
    %c0_i32_1 = arith.constant 0 : i32
    return %c0_i32, %c0_i32_0 : i32, i32
  }
  func.func @transform_4(%arg0: i32) -> (i32, i32) {
    %c0_i32 = arith.constant 0 : i32
    %c0_i32_0 = arith.constant 0 : i32
    return %arg0, %c0_i32 : i32, i32
  }
}

</mosaic_0001>

<bundles_post_ra>
// kernel: tpu_custom_call.1
= control target key start
LH: loop header
LB: loop body
LE: loop exit
PB: predicated region body
PF: predicated region fallthrough
CT: control target
= control target key end

     0   :  { %9 = vsyncpa [#allocation3], 0  ;;  %s2178_s0 = inlined_call_operand.vmem [shape: s32[16,1], index: 0, kind: input, shape index: {}]   ;;  %s2179_s1 = inlined_call_operand.hbm [shape: bf16[128,1024], index: 1, kind: input, shape index: {}]   ;;  %s2180_s2 = inlined_call_operand.vmem [shape: bf16[32,128], index: 2, kind: input, shape index: {}]   ;;  %s2181_s3 = inlined_call_operand.hbm [shape: bf16[32,128], index: 3, kind: input, shape index: {}]   ;;  %s2182_s4 = inlined_call_operand.hbm [shape: f32[16,64], index: 4, kind: output, shape index: {}]  }
   0x1   :  { %10 = vsyncpa [#allocation6], 0 }
   0x2   :  { %11 = vsyncpa [#allocation4], 0  ;;  %s18_s17 = sshll.u32 %s2179_s1, 4  ;;  %s1955_s18 = smov [#allocation2]   ;;  %s19_s17 = int_to_ptr.hbm [resolvable:$true] %s18_s17 }
   0x3   :  { %s20_s19 = sshll.u32 %s1955_s18, 4  ;;  %s33_s22 = sshll.u32 %s2181_s3, 4  ;;  %s21_s19 = int_to_ptr.vmem [resolvable:$true] %s20_s19  ;;  %s34_s22 = int_to_ptr.hbm [resolvable:$true] %s33_s22 }
   0x4   :  { %s1956_s23 = smov 512   ;;  %s1957_s24 = smov 32  }
   0x5   :  { %26 = dma.hbm_to_vmem [thread:$0]  %s19_s17, 8192, %s21_s19, [#allocation3], %s1956_s23, %s1956_s23, %s1957_s24  }
   0x6   :  { %s1958_s25 = smov [#allocation5]   ;;  %s1959_s27 = smov 64  }
   0x7   :  { %s35_s26 = sshll.u32 %s1958_s25, 4  ;;  %s1960_s28 = smov 4   ;;  %s36_s26 = int_to_ptr.vmem [resolvable:$true] %s35_s26 }
   0x8   :  { %41 = dma.hbm_to_vmem [thread:$0]  %s34_s22, 256, %s36_s26, [#allocation6], %s1959_s27, %s1959_s27, %s1960_s28  }
   0x9   :  { %1949 = dma.done.wait [#allocation3], 8192  }
   0xa   :  { %1950 = vsyncadd [#allocation3], 4294959104 }
   0xb   :  { %1951 = dma.done.wait [#allocation6], 256  }
   0xc   :  { %1952 = vsyncadd [#allocation6], 4294967040  ;;  %v1961_v0 = vmov 0   ;;  %v51_v1 = vld [vmem:[%s2178_s0] sm:$0xff]  ;;  %v1592_v8 = vld [vmem:[#allocation2 + $0x1c8] sm:$0xf] }
   0xd   :  { %1748 = vset.pattern.permute.xlu0 %v1961_v0  ;;  %v1584_v2 = vld [vmem:[#allocation2 + $0x1c0] sm:$0xf]  ;;  %v1724_v4 = vld [vmem:[#allocation2 + $0x1c4] sm:$0xf]  ;;  %v1729_v9 = vld [vmem:[#allocation2 + $0x1e4] sm:$0xf0] }
   0xe   :  { %56 = vperm.xlu0 %1748, %v51_v1   ;;  %v1728_v3 = vld [vmem:[#allocation2 + $0x1dc] sm:$0xf0]  ;;  %v1586_v5 = vld [vmem:[#allocation2 + $0x1e0] sm:$0xf0]  ;;  %v1725_v10 = vld [vmem:[#allocation2 + $0x1cc] sm:$0xf]  ;;  %v1593_v11 = vor.u32 %v1729_v9, %v1592_v8 }
   0xf   :  { %v1585_v6 = vor.u32 %v1728_v3, %v1584_v2  ;;  %v1589_v7 = vor.u32 %v1724_v4, %v1586_v5  ;;  %v1594_v12 = vld [vmem:[#allocation2 + $0x1e8] sm:$0xf0]  ;;  %v1552_v13 = vld [vmem:[#allocation2 + $0x180] sm:$0xf]  ;;  %v1716_v18 = vld [vmem:[#allocation2 + $0x184] sm:$0xf] }
  0x10   :  { %v1720_v14 = vld [vmem:[#allocation2 + $0x19c] sm:$0xf0]  ;;  %v52_v15 = vld [vmem:[%s2178_s0 + $0x8] sm:$0xff]  ;;  %v1597_v16 = vor.u32 %v1725_v10, %v1594_v12  ;;  %v1554_v19 = vld [vmem:[#allocation2 + $0x1a0] sm:$0xf0]  ;;  %478 = vmatpush.bf16.msra.mxu2 %v1593_v11  ;;  %s1963_s0 = smov 96  }
  0x11   :  { %450 = vmatpush.bf16.msra.mxu0 %v1585_v6  ;;  %464 = vmatpush.bf16.msra.mxu1 %v1589_v7  ;;  %v1553_v17 = vor.u32 %v1720_v14, %v1552_v13  ;;  %v1560_v20 = vld [vmem:[#allocation2 + $0x188] sm:$0xf]  ;;  %v1557_v21 = vor.u32 %v1716_v18, %v1554_v19  ;;  %v1717_v23 = vld [vmem:[#allocation2 + $0x18c] sm:$0xf]  ;;  %v1520_v27 = vld [vmem:[#allocation2 + $0x140] sm:$0xf] }
  0x12   :  { %v1721_v22 = vld [vmem:[#allocation2 + $0x1a4] sm:$0xf0]  ;;  %v1562_v24 = vld [vmem:[#allocation2 + $0x1a8] sm:$0xf0]  ;;  %492 = vmatpush.bf16.msra.mxu3 %v1597_v16  ;;  %v1712_v28 = vld [vmem:[#allocation2 + $0x15c] sm:$0xf0] }
  0x13   :  { %v1561_v25 = vor.u32 %v1721_v22, %v1560_v20  ;;  %v1565_v26 = vor.u32 %v1717_v23, %v1562_v24  ;;  %v1708_v29 = vld [vmem:[#allocation2 + $0x144] sm:$0xf]  ;;  %v1528_v31 = vld [vmem:[#allocation2 + $0x148] sm:$0xf]  ;;  %v1521_v33 = vor.u32 %v1712_v28, %v1520_v27  ;;  %v1709_v35 = vld [vmem:[#allocation2 + $0x14c] sm:$0xf] }
  0x14   :  { %v1522_v30 = vld [vmem:[#allocation2 + $0x160] sm:$0xf0]  ;;  %v1713_v32 = vld [vmem:[#allocation2 + $0x164] sm:$0xf0]  ;;  %v1530_v36 = vld [vmem:[#allocation2 + $0x168] sm:$0xf0] }
  0x15   :  { %451 = vmatpush.bf16.msra.mxu0 %v1553_v17  ;;  %465 = vmatpush.bf16.msra.mxu1 %v1557_v21  ;;  %v1525_v34 = vor.u32 %v1708_v29, %v1522_v30  ;;  %v1488_v37 = vld [vmem:[#allocation2 + $0x100] sm:$0xf]  ;;  %v1529_v38 = vor.u32 %v1713_v32, %v1528_v31  ;;  %v1700_v40 = vld [vmem:[#allocation2 + $0x104] sm:$0xf]  ;;  %v1533_v42 = vor.u32 %v1709_v35, %v1530_v36  ;;  %v1496_v43 = vld [vmem:[#allocation2 + $0x108] sm:$0xf] }
  0x16   :  { %59 = vperm.xlu0 %1748, %v52_v15   ;;  %479 = vmatpush.bf16.msra.mxu2 %v1561_v25  ;;  %v1704_v39 = vld [vmem:[#allocation2 + $0x11c] sm:$0xf0]  ;;  %v1490_v41 = vld [vmem:[#allocation2 + $0x120] sm:$0xf0]  ;;  %v1705_v44 = vld [vmem:[#allocation2 + $0x124] sm:$0xf0] }
  0x17   :  { %493 = vmatpush.bf16.msra.mxu3 %v1565_v26  ;;  %v1701_v45 = vld [vmem:[#allocation2 + $0x10c] sm:$0xf]  ;;  %v1489_v47 = vor.u32 %v1704_v39, %v1488_v37  ;;  %v1493_v48 = vor.u32 %v1700_v40, %v1490_v41  ;;  %v1456_v49 = vld [vmem:[#allocation2 + $0xc0] sm:$0xf]  ;;  %v1497_v50 = vor.u32 %v1705_v44, %v1496_v43  ;;  %v1692_v52 = vld [vmem:[#allocation2 + $0xc4] sm:$0xf] }
  0x18   :  { %v1498_v46 = vld [vmem:[#allocation2 + $0x128] sm:$0xf0]  ;;  %v1696_v51 = vld [vmem:[#allocation2 + $0xdc] sm:$0xf0]  ;;  %v1458_v53 = vld [vmem:[#allocation2 + $0xe0] sm:$0xf0] }
  0x19   :  { %452 = vmatpush.bf16.msra.mxu0 %v1521_v33  ;;  %466 = vmatpush.bf16.msra.mxu1 %v1525_v34  ;;  %v1501_v54 = vor.u32 %v1701_v45, %v1498_v46  ;;  %v1464_v55 = vld [vmem:[#allocation2 + $0xc8] sm:$0xf]  ;;  %v1693_v57 = vld [vmem:[#allocation2 + $0xcc] sm:$0xf]  ;;  %v1457_v59 = vor.u32 %v1696_v51, %v1456_v49  ;;  %v1461_v60 = vor.u32 %v1692_v52, %v1458_v53  ;;  %v1424_v61 = vld [vmem:[#allocation2 + $0x80] sm:$0xf] }
  0x1a   :  { %480 = vmatpush.bf16.msra.mxu2 %v1529_v38  ;;  %v1697_v56 = vld [vmem:[#allocation2 + $0xe4] sm:$0xf0]  ;;  %v1466_v58 = vld [vmem:[#allocation2 + $0xe8] sm:$0xf0]  ;;  %v1688_v63 = vld [vmem:[#allocation2 + $0x9c] sm:$0xf0] }
  0x1b   :  { %494 = vmatpush.bf16.msra.mxu3 %v1533_v42  ;;  %v1465_v62 = vor.u32 %v1697_v56, %v1464_v55  ;;  %v1684_v0 = vld [vmem:[#allocation2 + $0x84] sm:$0xf]  ;;  %v1469_v2 = vor.u32 %v1693_v57, %v1466_v58  ;;  %v1432_v3 = vld [vmem:[#allocation2 + $0x88] sm:$0xf]  ;;  %v1685_v5 = vld [vmem:[#allocation2 + $0x8c] sm:$0xf]  ;;  %v1425_v7 = vor.u32 %v1688_v63, %v1424_v61 }
  0x1c   :  { %v1426_v1 = vld [vmem:[#allocation2 + $0xa0] sm:$0xf0]  ;;  %v1689_v4 = vld [vmem:[#allocation2 + $0xa4] sm:$0xf0]  ;;  %v1434_v6 = vld [vmem:[#allocation2 + $0xa8] sm:$0xf0] }
  0x1d   :  { %453 = vmatpush.bf16.msra.mxu0 %v1489_v47  ;;  %467 = vmatpush.bf16.msra.mxu1 %v1493_v48  ;;  %v1429_v8 = vor.u32 %v1684_v0, %v1426_v1  ;;  %v1392_v9 = vld [vmem:[#allocation2 + $0x40] sm:$0xf]  ;;  %v1433_v10 = vor.u32 %v1689_v4, %v1432_v3  ;;  %v1676_v12 = vld [vmem:[#allocation2 + $0x44] sm:$0xf]  ;;  %v1437_v14 = vor.u32 %v1685_v5, %v1434_v6  ;;  %v1400_v15 = vld [vmem:[#allocation2 + $0x48] sm:$0xf] }
  0x1e   :  { %481 = vmatpush.bf16.msra.mxu2 %v1497_v50  ;;  %v1680_v11 = vld [vmem:[#allocation2 + $0x5c] sm:$0xf0]  ;;  %v1394_v13 = vld [vmem:[#allocation2 + $0x60] sm:$0xf0]  ;;  %v1681_v16 = vld [vmem:[#allocation2 + $0x64] sm:$0xf0] }
  0x1f   :  { %495 = vmatpush.bf16.msra.mxu3 %v1501_v54  ;;  %v1677_v17 = vld [vmem:[#allocation2 + $0x4c] sm:$0xf]  ;;  %v1360_v19 = vld [vmem:[#allocation2] sm:$0xf]  ;;  %v1393_v20 = vor.u32 %v1680_v11, %v1392_v9  ;;  %v1397_v21 = vor.u32 %v1676_v12, %v1394_v13  ;;  %v1668_v23 = vld [vmem:[#allocation2 + $0x4] sm:$0xf]  ;;  %v1401_v25 = vor.u32 %v1681_v16, %v1400_v15 }
  0x20   :  { %v1402_v18 = vld [vmem:[#allocation2 + $0x68] sm:$0xf0]  ;;  %v1672_v22 = vld [vmem:[#allocation2 + $0x1c] sm:$0xf0]  ;;  %v1362_v24 = vld [vmem:[#allocation2 + $0x20] sm:$0xf0] }
  0x21   :  { %454 = vmatpush.bf16.msra.mxu0 %v1457_v59  ;;  %468 = vmatpush.bf16.msra.mxu1 %v1461_v60  ;;  %v1368_v26 = vld [vmem:[#allocation2 + $0x8] sm:$0xf]  ;;  %v1669_v28 = vld [vmem:[#allocation2 + $0xc] sm:$0xf]  ;;  %v1405_v29 = vor.u32 %v1677_v17, %v1402_v18  ;;  %v1600_v31 = vld [vmem:[#allocation2 + $0x1d0] sm:$0xf]  ;;  %v1361_v36 = vor.u32 %v1672_v22, %v1360_v19  ;;  %v1365_v37 = vor.u32 %v1668_v23, %v1362_v24 }
  0x22   :  { %482 = vmatpush.bf16.msra.mxu2 %v1465_v62  ;;  %v1673_v27 = vld [vmem:[#allocation2 + $0x24] sm:$0xf0]  ;;  %v1370_v30 = vld [vmem:[#allocation2 + $0x28] sm:$0xf0]  ;;  %v1730_v32 = vld [vmem:[#allocation2 + $0x1ec] sm:$0xf0] }
  0x23   :  { %496 = vmatpush.bf16.msra.mxu3 %v1469_v2  ;;  %v1726_v33 = vld [vmem:[#allocation2 + $0x1d4] sm:$0xf]  ;;  %v1608_v35 = vld [vmem:[#allocation2 + $0x1d8] sm:$0xf]  ;;  %v1727_v39 = vld [vmem:[#allocation2 + $0x1dc] sm:$0xf]  ;;  %v1369_v41 = vor.u32 %v1673_v27, %v1368_v26  ;;  %v1601_v42 = vor.u32 %v1730_v32, %v1600_v31  ;;  %v1373_v43 = vor.u32 %v1669_v28, %v1370_v30 }
  0x24   :  { %v1602_v34 = vld [vmem:[#allocation2 + $0x1f0] sm:$0xf0]  ;;  %v1731_v38 = vld [vmem:[#allocation2 + $0x1f4] sm:$0xf0]  ;;  %v1610_v40 = vld [vmem:[#allocation2 + $0x1f8] sm:$0xf0] }
  0x25   :  { %455 = vmatpush.bf16.msra.mxu0 %v1425_v7  ;;  %469 = vmatpush.bf16.msra.mxu1 %v1429_v8  ;;  %v1605_v44 = vor.u32 %v1726_v33, %v1602_v34  ;;  %v1568_v45 = vld [vmem:[#allocation2 + $0x190] sm:$0xf]  ;;  %v1609_v47 = vor.u32 %v1731_v38, %v1608_v35  ;;  %v1613_v48 = vor.u32 %v1727_v39, %v1610_v40  ;;  %v1718_v49 = vld [vmem:[#allocation2 + $0x194] sm:$0xf]  ;;  %v1576_v51 = vld [vmem:[#allocation2 + $0x198] sm:$0xf] }
  0x26   :  { %483 = vmatpush.bf16.msra.mxu2 %v1433_v10  ;;  %v1722_v46 = vld [vmem:[#allocation2 + $0x1ac] sm:$0xf0]  ;;  %v1570_v50 = vld [vmem:[#allocation2 + $0x1b0] sm:$0xf0]  ;;  %v1723_v52 = vld [vmem:[#allocation2 + $0x1b4] sm:$0xf0] }
  0x27   :  { %497 = vmatpush.bf16.msra.mxu3 %v1437_v14  ;;  %v1719_v53 = vld [vmem:[#allocation2 + $0x19c] sm:$0xf]  ;;  %v1569_v55 = vor.u32 %v1722_v46, %v1568_v45  ;;  %v1573_v56 = vor.u32 %v1718_v49, %v1570_v50  ;;  %v1577_v57 = vor.u32 %v1723_v52, %v1576_v51  ;;  %v1536_v59 = vld [vmem:[#allocation2 + $0x150] sm:$0xf]  ;;  %v1710_v61 = vld [vmem:[#allocation2 + $0x154] sm:$0xf] }
  0x28   :  { %v1578_v54 = vld [vmem:[#allocation2 + $0x1b8] sm:$0xf0]  ;;  %v1714_v60 = vld [vmem:[#allocation2 + $0x16c] sm:$0xf0]  ;;  %v1538_v63 = vld [vmem:[#allocation2 + $0x170] sm:$0xf0] }
  0x29   :  { %456 = vmatpush.bf16.msra.mxu0 %v1393_v20  ;;  %470 = vmatpush.bf16.msra.mxu1 %v1397_v21  ;;  %v1581_v58 = vor.u32 %v1719_v53, %v1578_v54  ;;  %v1537_v62 = vor.u32 %v1714_v60, %v1536_v59  ;;  %v1544_v0 = vld [vmem:[#allocation2 + $0x158] sm:$0xf]  ;;  %v1541_v2 = vor.u32 %v1710_v61, %v1538_v63  ;;  %v1711_v4 = vld [vmem:[#allocation2 + $0x15c] sm:$0xf]  ;;  %v1504_v6 = vld [vmem:[#allocation2 + $0x110] sm:$0xf] }
  0x2a   :  { %484 = vmatpush.bf16.msra.mxu2 %v1401_v25  ;;  %v1715_v1 = vld [vmem:[#allocation2 + $0x174] sm:$0xf0]  ;;  %v1546_v5 = vld [vmem:[#allocation2 + $0x178] sm:$0xf0]  ;;  %v1706_v8 = vld [vmem:[#allocation2 + $0x12c] sm:$0xf0] }
  0x2b   :  { %498 = vmatpush.bf16.msra.mxu3 %v1405_v29  ;;  %v1545_v3 = vor.u32 %v1715_v1, %v1544_v0  ;;  %v1549_v7 = vor.u32 %v1711_v4, %v1546_v5  ;;  %v1702_v9 = vld [vmem:[#allocation2 + $0x114] sm:$0xf]  ;;  %v1505_v11 = vor.u32 %v1706_v8, %v1504_v6  ;;  %v1512_v13 = vld [vmem:[#allocation2 + $0x118] sm:$0xf]  ;;  %v1703_v15 = vld [vmem:[#allocation2 + $0x11c] sm:$0xf]  ;;  %v53_v4 = vlaneseq }
  0x2c   :  { %v1506_v10 = vld [vmem:[#allocation2 + $0x130] sm:$0xf0]  ;;  %v1707_v14 = vld [vmem:[#allocation2 + $0x134] sm:$0xf0]  ;;  %v1514_v17 = vld [vmem:[#allocation2 + $0x138] sm:$0xf0] }
  0x2d   :  { %457 = vmatpush.bf16.msra.mxu0 %v1361_v36  ;;  %471 = vmatpush.bf16.msra.mxu1 %v1365_v37  ;;  %v1509_v12 = vor.u32 %v1702_v9, %v1506_v10  ;;  %v1513_v16 = vor.u32 %v1707_v14, %v1512_v13  ;;  %v1517_v18 = vor.u32 %v1703_v15, %v1514_v17  ;;  %v1472_v19 = vld [vmem:[#allocation2 + $0xd0] sm:$0xf]  ;;  %v1694_v22 = vld [vmem:[#allocation2 + $0xd4] sm:$0xf]  ;;  %v1480_v24 = vld [vmem:[#allocation2 + $0xd8] sm:$0xf] }
  0x2e   :  { %485 = vmatpush.bf16.msra.mxu2 %v1369_v41  ;;  %v1698_v20 = vld [vmem:[#allocation2 + $0xec] sm:$0xf0]  ;;  %v1474_v23 = vld [vmem:[#allocation2 + $0xf0] sm:$0xf0]  ;;  %v1699_v26 = vld [vmem:[#allocation2 + $0xf4] sm:$0xf0] }
  0x2f   :  { %499 = vmatpush.bf16.msra.mxu3 %v1373_v43  ;;  %v1473_v21 = vor.u32 %v1698_v20, %v1472_v19  ;;  %v1477_v25 = vor.u32 %v1694_v22, %v1474_v23  ;;  %v1695_v27 = vld [vmem:[#allocation2 + $0xdc] sm:$0xf]  ;;  %v1481_v29 = vor.u32 %v1699_v26, %v1480_v24  ;;  %v1440_v31 = vld [vmem:[#allocation2 + $0x90] sm:$0xf]  ;;  %v1686_v33 = vld [vmem:[#allocation2 + $0x94] sm:$0xf] }
  0x30   :  { %v1482_v28 = vld [vmem:[#allocation2 + $0xf8] sm:$0xf0]  ;;  %v1690_v32 = vld [vmem:[#allocation2 + $0xac] sm:$0xf0]  ;;  %v1442_v35 = vld [vmem:[#allocation2 + $0xb0] sm:$0xf0] }
  0x31   :  { %506 = vmatpush.bf16.msrb.mxu0 %v1601_v42  ;;  %520 = vmatpush.bf16.msrb.mxu1 %v1605_v44  ;;  %v1485_v30 = vor.u32 %v1695_v27, %v1482_v28  ;;  %v1441_v34 = vor.u32 %v1690_v32, %v1440_v31  ;;  %v1448_v36 = vld [vmem:[#allocation2 + $0x98] sm:$0xf]  ;;  %v1445_v38 = vor.u32 %v1686_v33, %v1442_v35  ;;  %v1687_v40 = vld [vmem:[#allocation2 + $0x9c] sm:$0xf]  ;;  %v1408_v42 = vld [vmem:[#allocation2 + $0x50] sm:$0xf] }
  0x32   :  { %534 = vmatpush.bf16.msrb.mxu2 %v1609_v47  ;;  %v1691_v37 = vld [vmem:[#allocation2 + $0xb4] sm:$0xf0]  ;;  %v1450_v41 = vld [vmem:[#allocation2 + $0xb8] sm:$0xf0]  ;;  %v1682_v44 = vld [vmem:[#allocation2 + $0x6c] sm:$0xf0] }
  0x33   :  { %548 = vmatpush.bf16.msrb.mxu3 %v1613_v48  ;;  %v1449_v39 = vor.u32 %v1691_v37, %v1448_v36  ;;  %v1453_v43 = vor.u32 %v1687_v40, %v1450_v41  ;;  %v1678_v45 = vld [vmem:[#allocation2 + $0x54] sm:$0xf]  ;;  %v1409_v47 = vor.u32 %v1682_v44, %v1408_v42  ;;  %v1416_v48 = vld [vmem:[#allocation2 + $0x58] sm:$0xf]  ;;  %v1679_v50 = vld [vmem:[#allocation2 + $0x5c] sm:$0xf] }
  0x34   :  { %v1410_v46 = vld [vmem:[#allocation2 + $0x70] sm:$0xf0]  ;;  %v1683_v49 = vld [vmem:[#allocation2 + $0x74] sm:$0xf0]  ;;  %v1418_v52 = vld [vmem:[#allocation2 + $0x78] sm:$0xf0] }
  0x35   :  { %507 = vmatpush.bf16.msrb.mxu0 %v1569_v55  ;;  %521 = vmatpush.bf16.msrb.mxu1 %v1573_v56  ;;  %v1413_v51 = vor.u32 %v1678_v45, %v1410_v46  ;;  %v1376_v53 = vld [vmem:[#allocation2 + $0x10] sm:$0xf]  ;;  %v1417_v55 = vor.u32 %v1683_v49, %v1416_v48  ;;  %v1421_v56 = vor.u32 %v1679_v50, %v1418_v52  ;;  %v1384_v59 = vld [vmem:[#allocation2 + $0x18] sm:$0xf]  ;;  %v1671_v61 = vld [vmem:[#allocation2 + $0x1c] sm:$0xf] }
  0x36   :  { %535 = vmatpush.bf16.msrb.mxu2 %v1577_v57  ;;  %v1674_v54 = vld [vmem:[#allocation2 + $0x2c] sm:$0xf0]  ;;  %v1670_v57 = vld [vmem:[#allocation2 + $0x14] sm:$0xf]  ;;  %v1675_v60 = vld [vmem:[#allocation2 + $0x34] sm:$0xf0] }
  0x37   :  { %549 = vmatpush.bf16.msrb.mxu3 %v1581_v58  ;;  %v1378_v58 = vld [vmem:[#allocation2 + $0x30] sm:$0xf0]  ;;  %v1377_v63 = vor.u32 %v1674_v54, %v1376_v53  ;;  %v1385_v1 = vor.u32 %v1675_v60, %v1384_v59  ;;  %v54_v5 = vand.u32 127, %v53_v4  ;;  %s1344_s12 = sshll.u32 %s2182_s4, 4  ;;  %s1965_s13 = smov 128   ;;  %s1345_s12 = int_to_ptr.hbm [resolvable:$true] %s1344_s12 }
  0x38   :  { %v1381_v0 = vor.u32 %v1670_v57, %v1378_v58  ;;  %s1966_s14 = smov 8  }
  0x39   :  { %508 = vmatpush.bf16.msrb.mxu0 %v1537_v62  ;;  %522 = vmatpush.bf16.msrb.mxu1 %v1541_v2  ;;  %v1386_v62 = vld [vmem:[#allocation2 + $0x38] sm:$0xf0] }
  0x3a   :  { %536 = vmatpush.bf16.msrb.mxu2 %v1545_v3  ;;  %v1389_v2 = vor.u32 %v1671_v61, %v1386_v62 }
  0x3b   :  { %550 = vmatpush.bf16.msrb.mxu3 %v1549_v7  ;;  %v1962_v7 = vmov 1.0|1.0  }
  0x3d   :  { %509 = vmatpush.bf16.msrb.mxu0 %v1505_v11  ;;  %523 = vmatpush.bf16.msrb.mxu1 %v1509_v12 }
  0x3e   :  { %537 = vmatpush.bf16.msrb.mxu2 %v1513_v16 }
  0x3f   :  { %551 = vmatpush.bf16.msrb.mxu3 %v1517_v18 }
  0x41   :  { %510 = vmatpush.bf16.msrb.mxu0 %v1473_v21  ;;  %524 = vmatpush.bf16.msrb.mxu1 %v1477_v25 }
  0x42   :  { %538 = vmatpush.bf16.msrb.mxu2 %v1481_v29 }
  0x43   :  { %552 = vmatpush.bf16.msrb.mxu3 %v1485_v30 }
  0x45   :  { %511 = vmatpush.bf16.msrb.mxu0 %v1441_v34  ;;  %525 = vmatpush.bf16.msrb.mxu1 %v1445_v38 }
  0x46   :  { %539 = vmatpush.bf16.msrb.mxu2 %v1449_v39 }
  0x47   :  { %553 = vmatpush.bf16.msrb.mxu3 %v1453_v43 }
  0x49   :  { %512 = vmatpush.bf16.msrb.mxu0 %v1409_v47  ;;  %526 = vmatpush.bf16.msrb.mxu1 %v1413_v51 }
  0x4a   :  { %540 = vmatpush.bf16.msrb.mxu2 %v1417_v55 }
  0x4b   :  { %554 = vmatpush.bf16.msrb.mxu3 %v1421_v56 }
  0x4d   :  { %513 = vmatpush.bf16.msrb.mxu0 %v1377_v63  ;;  %527 = vmatpush.bf16.msrb.mxu1 %v1381_v0 }
  0x4e   :  { %541 = vmatpush.bf16.msrb.mxu2 %v1385_v1 }
  0x4f   :  { %555 = vmatpush.bf16.msrb.mxu3 %v1389_v2 }
  0x80   :  { %v57_v3 = vpop.permute.xlu0 %56 }
  0x81   :  { %vm61_vm0 = vcmp.eq.s32.totalorder %v54_v5, %v57_v3 }
  0x88   :  { %v60_v6 = vpop.permute.xlu0 %59 }
  0x89   :  { %vm62_vm1 = vcmp.eq.s32.totalorder %v54_v5, %v60_v6 }
  0x8a   :  { %vm1614_vm2 = vmpackc.low %vm62_vm1, %vm61_vm0 }
  0x8b   :  { %1615 = vmatmul.msk.bf16.vlgmr.msra.gmra.mxu0 %vm1614_vm2, %v1962_v7  ;;  %1617 = vmatmul.msk.bf16.vlgmr.msra.gmra.mxu1 %vm1614_vm2, %v1962_v7 }
  0x8c   :  { %1619 = vmatmul.msk.bf16.vlgmr.msra.gmra.mxu2 %vm1614_vm2, %v1962_v7  ;;  %1621 = vmatmul.msk.bf16.vlgmr.msra.gmra.mxu3 %vm1614_vm2, %v1962_v7 }
  0x9b   :  { %1623 = vmatmul.msk.bf16.vlgmr.msrb.gmra.mxu0 %vm1614_vm2, %v1962_v7  ;;  %1625 = vmatmul.msk.bf16.vlgmr.msrb.gmra.mxu1 %vm1614_vm2, %v1962_v7 }
  0x9c   :  { %1627 = vmatmul.msk.bf16.vlgmr.msrb.gmra.mxu2 %vm1614_vm2, %v1962_v7  ;;  %1629 = vmatmul.msk.bf16.vlgmr.msrb.gmra.mxu3 %vm1614_vm2, %v1962_v7 }
 0x108   :  { %v459_v8 = vpop.f32.mrf.mxu0 }
 0x109   :  { %1749 = vtanh.f32 %v459_v8  ;;  %v1630_v19 = vmul.f32 -1.442695, %v459_v8 }
 0x10f   :  { %v1750_v9 = vpop.eup %1749  ;;  %v2007_v10 = vpop.f32.mrf.mxu3 }
 0x110   :  { %612 = vrot.lane.b32.xlu1 %v1750_v9, %s1959_s27  ;;  %v461_v11 = vpop.f32.mrf.mxu0 }
 0x111   :  { %1751 = vtanh.f32 %v461_v11  ;;  %v1631_v21 = vmul.f32 -1.442695, %v461_v11 }
 0x117   :  { %v1752_v12 = vpop.eup %1751  ;;  %v2010_v13 = vpop.f32.mrf.mxu3 }
 0x118   :  { %614 = vrot.lane.b32.xlu1 %v1752_v12, %s1959_s27 }
 0x11f   :  { %v557_v14 = vpop.f32.mrf.mxu3 }
 0x120   :  { %1753 = vtanh.f32 %v557_v14  ;;  %v1632_v18 = vmul.f32 -1.442695, %v557_v14 }
 0x126   :  { %v1754_v15 = vpop.eup %1753 }
 0x127   :  { %674 = vrot.lane.b32.xlu2 %v1754_v15, %s1959_s27  ;;  %v559_v16 = vpop.f32.mrf.mxu3 }
 0x128   :  { %1755 = vtanh.f32 %v559_v16  ;;  %v1633_v20 = vmul.f32 -1.442695, %v559_v16 }
 0x129   :  { %1757 = vpow2.f32 %v1632_v18 }
 0x12a   :  { %1759 = vpow2.f32 %v1630_v19 }
 0x12b   :  { %1761 = vpow2.f32 %v1633_v20  ;;  %v1735_v20 = vld [vmem:[#allocation5 + $0x8] sm:$0xff] }
 0x12c   :  { %1763 = vpow2.f32 %v1631_v21  ;;  %753 = vmatpush.bf16.msra.mxu1 %v1735_v20  ;;  %v1734_v21 = vld [vmem:[#allocation5] sm:$0xff]  ;;  %963 = vmatpush.bf16.msra.mxu3 %v1735_v20 }
 0x12e   :  { %v1756_v17 = vpop.eup %1755 }
 0x12f   :  { %676 = vrot.lane.b32.xlu2 %v1756_v17, %s1959_s27  ;;  %v1758_v22 = vpop.eup %1757 }
 0x130   :  { %v1760_v23 = vpop.eup %1759  ;;  %v638_v24 = vadd.f32 1.0, %v1758_v22  ;;  %754 = vmatpush.bf16.msra.mxu1 %v1734_v21  ;;  %964 = vmatpush.bf16.msra.mxu3 %v1734_v21 }
 0x131   :  { %v576_v25 = vadd.f32 1.0, %v1760_v23  ;;  %v1762_v26 = vpop.eup %1761 }
 0x132   :  { %1765 = vrcp.f32 %v638_v24  ;;  %v1764_v27 = vpop.eup %1763  ;;  %v639_v28 = vadd.f32 1.0, %v1762_v26  ;;  %v651_v44 = vand.u32 2147483648, %v638_v24  ;;  %vm645_vm5 = vweird.f32 %v638_v24 }
 0x133   :  { %1767 = vrcp.f32 %v576_v25  ;;  %v2015_v29 = vadd.f32 1.0, %v1764_v27  ;;  %v649_v47 = vand.u32 2147483647, %v638_v24  ;;  %v589_v48 = vand.u32 2147483648, %v576_v25 }
 0x134   :  { %1769 = vrcp.f32 %v639_v28  ;;  %vm583_vm7 = vweird.f32 %v576_v25  ;;  %v587_v49 = vand.u32 2147483647, %v576_v25  ;;  %v652_v52 = vor.u32 1.1754944e-38, %v651_v44  ;;  %1157 = vmatpush.bf16.msrb.mxu1 %v1735_v20 }
 0x135   :  { %1771 = vrcp.f32 %v2015_v29  ;;  %vm650_vm9 = vcmp.eq.f32.partialorder %v649_v47, 8.507059e+37  ;;  %v590_v55 = vor.u32 1.1754944e-38, %v589_v48  ;;  %v666_v63 = vand.u32 2147483648, %v639_v28 }
 0x136   :  { %vm588_vm10 = vcmp.eq.f32.partialorder %v587_v49, 8.507059e+37  ;;  %vm660_vm13 = vweird.f32 %v639_v28  ;;  %v664_v1 = vand.u32 2147483647, %v639_v28  ;;  %v604_v2 = vand.u32 2147483648, %v2015_v29 }
 0x137   :  { %vm598_vm15 = vweird.f32 %v2015_v29  ;;  %v602_v3 = vand.u32 2147483647, %v2015_v29  ;;  %v667_v5 = vor.u32 1.1754944e-38, %v666_v63 }
 0x138   :  { %v1766_v30 = vpop.eup %1765  ;;  %vm665_vm1 = vcmp.eq.f32.partialorder %v664_v1, 8.507059e+37  ;;  %v605_v7 = vor.u32 1.1754944e-38, %v604_v2  ;;  %1158 = vmatpush.bf16.msrb.mxu1 %v1734_v21 }
 0x139   :  { %v1768_v31 = vpop.eup %1767  ;;  %v641_v32 = vmul.f32 %v1766_v30, %v638_v24  ;;  %vm646_vm3 = vweird.f32 %v1766_v30  ;;  %vm603_vm2 = vcmp.eq.f32.partialorder %v602_v3, 8.507059e+37 }
 0x13a   :  { %v579_v33 = vmul.f32 %v1768_v31, %v576_v25  ;;  %v1770_v35 = vpop.eup %1769  ;;  %vm584_vm4 = vweird.f32 %v1768_v31  ;;  %vm647_vm6 = vmor %vm645_vm5, %vm646_vm3  ;;  %vm710_vm3 = vcmask 261120  }
 0x13b   :  { %v642_v34 = vsub.f32 1.0, %v641_v32  ;;  %v1772_v37 = vpop.eup %1771  ;;  %v656_v39 = vmul.f32 %v1770_v35, %v639_v28  ;;  %vm585_vm8 = vmor %vm583_vm7, %vm584_vm4  ;;  %vm661_vm11 = vweird.f32 %v1770_v35  ;;  %v1733_v32 = vld [vmem:[%s2180_s2 + $0x8] sm:$0xff] }
 0x13c   :  { %v580_v36 = vsub.f32 1.0, %v579_v33  ;;  %v594_v41 = vmul.f32 %v1772_v37, %v2015_v29  ;;  %vm599_vm12 = vweird.f32 %v1772_v37  ;;  %vm662_vm14 = vmor %vm660_vm13, %vm661_vm11  ;;  %720 = vmatpush.bf16.msra.mxu0 %v1733_v32  ;;  %v1732_v33 = vld [vmem:[%s2180_s2] sm:$0xff]  ;;  %942 = vmatpush.bf16.msra.mxu2 %v1733_v32  ;;  %s1964_s2 = smov [#allocation7]  }
 0x13d   :  { %v643_v38 = vmul.f32 %v1766_v30, %v642_v34  ;;  %v657_v43 = vsub.f32 1.0, %v656_v39  ;;  %vm600_vm0 = vmor %vm598_vm15, %vm599_vm12  ;;  %s1342_s9 = sshll.u32 %s1964_s2, 4  ;;  %s1343_s9 = int_to_ptr.vmem [resolvable:$true] %s1342_s9 }
 0x13e   :  { %v581_v40 = vmul.f32 %v1768_v31, %v580_v36  ;;  %v595_v46 = vsub.f32 1.0, %v594_v41  ;;  %v2041_v36 = vpop.f32.mrf.mxu1 }
 0x13f   :  { %v644_v42 = vadd.f32 %v1766_v30, %v643_v38  ;;  %v658_v51 = vmul.f32 %v1770_v35, %v657_v43 }
 0x140   :  { %v582_v45 = vadd.f32 %v1768_v31, %v581_v40  ;;  %v596_v54 = vmul.f32 %v1772_v37, %v595_v46  ;;  %721 = vmatpush.bf16.msra.mxu0 %v1732_v33  ;;  %943 = vmatpush.bf16.msra.mxu2 %v1732_v33 }
 0x141   :  { %v648_v50 = vsel %vm647_vm6, %v1766_v30, %v644_v42  ;;  %v659_v61 = vadd.f32 %v1770_v35, %v658_v51  ;;  %v2045_v42 = vpop.f32.mrf.mxu0 }
 0x142   :  { %v586_v53 = vsel %vm585_vm8, %v1768_v31, %v582_v45  ;;  %v653_v57 = vsel %vm650_vm9, %v652_v52, %v648_v50  ;;  %v597_v0 = vadd.f32 %v1772_v37, %v596_v54  ;;  %v487_v45 = vpop.f32.mrf.mxu2 }
 0x143   :  { %v591_v60 = vsel %vm588_vm10, %v590_v55, %v586_v53  ;;  %v663_v4 = vsel %vm662_vm14, %v1770_v35, %v659_v61 }
 0x144   :  { %v601_v6 = vsel %vm600_vm0, %v1772_v37, %v597_v0  ;;  %v668_v9 = vsel %vm665_vm1, %v667_v5, %v663_v4  ;;  %1136 = vmatpush.bf16.msrb.mxu0 %v1733_v32 }
 0x145   :  { %v606_v15 = vsel %vm603_vm2, %v605_v7, %v601_v6 }
 0x146   :  { %v2043_v37 = vpop.f32.mrf.mxu1 }
 0x148   :  { %1137 = vmatpush.bf16.msrb.mxu0 %v1732_v33 }
 0x149   :  { %v2048_v44 = vpop.f32.mrf.mxu0 }
 0x14a   :  { %v489_v50 = vpop.f32.mrf.mxu2 }
 0x14e   :  { %v529_v38 = vpop.f32.mrf.mxu1 }
 0x156   :  { %v531_v39 = vpop.f32.mrf.mxu1 }
 0x181   :  { %v675_v56 = vpop.permute.xlu2 %674 }
 0x182   :  { %v2019_v58 = vmul.f32 %v675_v56, %v653_v57  ;;  %v613_v59 = vpop.permute.xlu1 %612 }
 0x183   :  { %v2021_v62 = vmul.f32 %v613_v59, %v591_v60 }
 0x184   :  { %1773 = vtanh.f32 %v2019_v58 }
 0x185   :  { %1775 = vtanh.f32 %v2021_v62 }
 0x189   :  { %v677_v8 = vpop.permute.xlu2 %676 }
 0x18a   :  { %v1774_v11 = vpop.eup %1773  ;;  %v2028_v12 = vmul.f32 %v677_v8, %v668_v9  ;;  %v615_v14 = vpop.permute.xlu1 %614 }
 0x18b   :  { %v1776_v16 = vpop.eup %1775  ;;  %686 = vrot.lane.b32.xlu2 %v1774_v11, %s1963_s0  ;;  %v619_v17 = vmul.f32 %v615_v14, %v606_v15 }
 0x18c   :  { %1777 = vtanh.f32 %v2028_v12  ;;  %624 = vrot.lane.b32.xlu0 %v1776_v16, %s1963_s0 }
 0x18d   :  { %1779 = vtanh.f32 %v619_v17 }
 0x192   :  { %v1778_v18 = vpop.eup %1777 }
 0x193   :  { %v1780_v19 = vpop.eup %1779 }
 0x194   :  { %688 = vrot.lane.b32.xlu0 %v1778_v18, %s1963_s0  ;;  %626 = vrot.lane.b32.xlu1 %v1780_v19, %s1963_s0 }
 0x1e5   :  { %v687_v23 = vpop.permute.xlu2 %686 }
 0x1e6   :  { %v692_v26 = vmul.f32 %v687_v23, %v653_v57 }
 0x1fe   :  { %v625_v22 = vpop.permute.xlu0 %624 }
 0x1ff   :  { %v630_v27 = vmul.f32 %v625_v22, %v591_v60 }
 0x206   :  { %v689_v24 = vpop.permute.xlu0 %688  ;;  %v627_v25 = vpop.permute.xlu1 %626 }
 0x207   :  { %v693_v28 = vmul.f32 %v689_v24, %v668_v9  ;;  %v631_v29 = vmul.f32 %v627_v25, %v606_v15 }
 0x209   :  { %v728_v30 = vpack.c.bf16 %v693_v28, %v692_v26  ;;  %v694_v31 = vpack.c.bf16 %v631_v29, %v630_v27 }
 0x20b   :  { %730 = vrot.lane.b32.xlu2 %v728_v30, %s1957_s24  ;;  %696 = vrot.lane.b32.xlu1 %v694_v31, %s1957_s24 }
 0x265   :  { %v731_v34 = vpop.permute.xlu2 %730 }
 0x266   :  { %1651 = vmatmul.msk.bf16.vlgmr.msra.gmra.mxu1 %vm710_vm3, %v731_v34 }
 0x27d   :  { %v697_v35 = vpop.permute.xlu1 %696 }
 0x27e   :  { %1642 = vmatmul.msk.bf16.vlgmr.msra.gmra.mxu0 %vm710_vm3, %v697_v35 }
 0x2e3   :  { %v756_v40 = vpop.f32.mrf.mxu1 }
 0x2e4   :  { %v845_v41 = vadd.f32 %v756_v40, %v529_v38 }
 0x2e6   :  { %1781 = vtanh.f32 %v845_v41  ;;  %v1654_v56 = vmul.f32 -1.442695, %v845_v41 }
 0x2eb   :  { %v758_v48 = vpop.f32.mrf.mxu1 }
 0x2ec   :  { %v1782_v43 = vpop.eup %1781  ;;  %v846_v49 = vadd.f32 %v758_v48, %v531_v39 }
 0x2ed   :  { %899 = vrot.lane.b32.xlu2 %v1782_v43, %s1959_s27 }
 0x2ee   :  { %v1655_v8 = vmul.f32 -1.442695, %v846_v49 }
 0x2f5   :  { %807 = vrot.lane.b32.xlu2 %v619_v17, %s1957_s24 }
 0x2fb   :  { %v723_v46 = vpop.f32.mrf.mxu0 }
 0x2fc   :  { %v761_v47 = vadd.f32 %v723_v46, %v487_v45 }
 0x2fe   :  { %1783 = vtanh.f32 %v761_v47  ;;  %v1652_v7 = vmul.f32 -1.442695, %v761_v47 }
 0x2ff   :  { %1785 = vtanh.f32 %v846_v49 }
 0x303   :  { %v725_v51 = vpop.f32.mrf.mxu0 }
 0x304   :  { %v1784_v52 = vpop.eup %1783  ;;  %v762_v53 = vadd.f32 %v725_v51, %v489_v50 }
 0x305   :  { %815 = vrot.lane.b32.xlu0 %v1784_v52, %s1959_s27  ;;  %v1786_v54 = vpop.eup %1785 }
 0x306   :  { %1787 = vtanh.f32 %v762_v53  ;;  %v1653_v9 = vmul.f32 -1.442695, %v762_v53 }
 0x307   :  { %1789 = vpow2.f32 %v1654_v56 }
 0x30c   :  { %v1788_v55 = vpop.eup %1787 }
 0x30d   :  { %901 = vrot.lane.b32.xlu0 %v1786_v54, %s1959_s27  ;;  %817 = vrot.lane.b32.xlu1 %v1788_v55, %s1959_s27  ;;  %v1790_v57 = vpop.eup %1789 }
 0x30e   :  { %v853_v59 = vadd.f32 1.0, %v1790_v57 }
 0x310   :  { %1791 = vrcp.f32 %v853_v59  ;;  %v866_v2 = vand.u32 2147483648, %v853_v59  ;;  %vm860_vm5 = vweird.f32 %v853_v59 }
 0x311   :  { %1793 = vpow2.f32 %v1652_v7 }
 0x312   :  { %1795 = vpow2.f32 %v1655_v8 }
 0x313   :  { %1797 = vpow2.f32 %v1653_v9 }
 0x315   :  { %889 = vrot.lane.b32.xlu0 %v2019_v58, %s1957_s24  ;;  %805 = vrot.lane.b32.xlu1 %v2021_v62, %s1957_s24  ;;  %v864_v58 = vand.u32 2147483647, %v853_v59  ;;  %v867_v62 = vor.u32 1.1754944e-38, %v866_v2 }
 0x316   :  { %v1792_v60 = vpop.eup %1791 }
 0x317   :  { %v856_v61 = vmul.f32 %v1792_v60, %v853_v59  ;;  %vm861_vm4 = vweird.f32 %v1792_v60  ;;  %vm865_vm7 = vcmp.eq.f32.partialorder %v864_v58, 8.507059e+37  ;;  %v1794_v11 = vpop.eup %1793 }
 0x318   :  { %vm862_vm6 = vmor %vm860_vm5, %vm861_vm4  ;;  %v1796_v14 = vpop.eup %1795 }
 0x319   :  { %v857_v63 = vsub.f32 1.0, %v856_v61  ;;  %v1798_v15 = vpop.eup %1797  ;;  %v854_v16 = vadd.f32 1.0, %v1796_v14 }
 0x31a   :  { %v770_v17 = vadd.f32 1.0, %v1798_v15 }
 0x31b   :  { %v858_v0 = vmul.f32 %v1792_v60, %v857_v63  ;;  %vm875_vm14 = vweird.f32 %v854_v16  ;;  %v881_v45 = vand.u32 2147483648, %v854_v16  ;;  %v879_v47 = vand.u32 2147483647, %v854_v16 }
 0x31c   :  { %v797_v43 = vand.u32 2147483648, %v770_v17  ;;  %vm791_vm15 = vweird.f32 %v770_v17  ;;  %v795_v46 = vand.u32 2147483647, %v770_v17 }
 0x31d   :  { %891 = vrot.lane.b32.xlu1 %v2028_v12, %s1957_s24  ;;  %v859_v1 = vadd.f32 %v1792_v60, %v858_v0  ;;  %v769_v12 = vadd.f32 1.0, %v1794_v11  ;;  %v882_v51 = vor.u32 1.1754944e-38, %v881_v45  ;;  %vm880_vm4 = vcmp.eq.f32.partialorder %v879_v47, 8.507059e+37 }
 0x31e   :  { %v798_v50 = vor.u32 1.1754944e-38, %v797_v43  ;;  %vm796_vm2 = vcmp.eq.f32.partialorder %v795_v46, 8.507059e+37 }
 0x31f   :  { %v863_v3 = vsel %vm862_vm6, %v1792_v60, %v859_v1  ;;  %1799 = vrcp.f32 %v769_v12  ;;  %v782_v29 = vand.u32 2147483648, %v769_v12  ;;  %vm776_vm9 = vweird.f32 %v769_v12 }
 0x320   :  { %v2060_v5 = vsel %vm865_vm7, %v867_v62, %v863_v3  ;;  %1801 = vrcp.f32 %v854_v16  ;;  %v780_v30 = vand.u32 2147483647, %v769_v12 }
 0x321   :  { %1803 = vrcp.f32 %v770_v17  ;;  %v783_v34 = vor.u32 1.1754944e-38, %v782_v29 }
 0x322   :  { %vm781_vm11 = vcmp.eq.f32.partialorder %v780_v30, 8.507059e+37 }
 0x325   :  { %v1800_v18 = vpop.eup %1799 }
 0x326   :  { %v772_v19 = vmul.f32 %v1800_v18, %v769_v12  ;;  %v1802_v20 = vpop.eup %1801  ;;  %vm777_vm8 = vweird.f32 %v1800_v18 }
 0x327   :  { %v1804_v22 = vpop.eup %1803  ;;  %v871_v25 = vmul.f32 %v1802_v20, %v854_v16  ;;  %vm778_vm10 = vmor %vm776_vm9, %vm777_vm8  ;;  %vm876_vm12 = vweird.f32 %v1802_v20 }
 0x328   :  { %v773_v21 = vsub.f32 1.0, %v772_v19  ;;  %v787_v23 = vmul.f32 %v1804_v22, %v770_v17  ;;  %vm792_vm13 = vweird.f32 %v1804_v22  ;;  %vm877_vm0 = vmor %vm875_vm14, %vm876_vm12 }
 0x329   :  { %v872_v28 = vsub.f32 1.0, %v871_v25  ;;  %vm793_vm1 = vmor %vm791_vm15, %vm792_vm13 }
 0x32a   :  { %v774_v24 = vmul.f32 %v1800_v18, %v773_v21  ;;  %v788_v26 = vsub.f32 1.0, %v787_v23 }
 0x32b   :  { %v873_v33 = vmul.f32 %v1802_v20, %v872_v28 }
 0x32c   :  { %v775_v27 = vadd.f32 %v1800_v18, %v774_v24  ;;  %v789_v31 = vmul.f32 %v1804_v22, %v788_v26 }
 0x32d   :  { %v874_v41 = vadd.f32 %v1802_v20, %v873_v33 }
 0x32e   :  { %v779_v32 = vsel %vm778_vm10, %v1800_v18, %v775_v27  ;;  %v790_v39 = vadd.f32 %v1804_v22, %v789_v31  ;;  %v2096_v31 = vpop.f32.mrf.mxu2 }
 0x32f   :  { %v2064_v38 = vsel %vm781_vm11, %v783_v34, %v779_v32  ;;  %v878_v49 = vsel %vm877_vm0, %v1802_v20, %v874_v41 }
 0x330   :  { %v794_v48 = vsel %vm793_vm1, %v1804_v22, %v790_v39  ;;  %v883_v53 = vsel %vm880_vm4, %v882_v51, %v878_v49 }
 0x331   :  { %v799_v52 = vsel %vm796_vm2, %v798_v50, %v794_v48 }
 0x336   :  { %v2098_v32 = vpop.f32.mrf.mxu2 }
 0x347   :  { %v900_v4 = vpop.permute.xlu2 %899 }
 0x348   :  { %v905_v6 = vmul.f32 %v900_v4, %v2060_v5 }
 0x34a   :  { %909 = vrot.lane.b32.xlu1 %v905_v6, %s1957_s24 }
 0x34f   :  { %v808_v58 = vpop.permute.xlu2 %807 }
 0x350   :  { %v812_v12 = vmul.f32 %v808_v58, %v799_v52 }
 0x377   :  { %v816_v35 = vpop.permute.xlu0 %815 }
 0x378   :  { %v821_v40 = vmul.f32 %v816_v35, %v2064_v38 }
 0x37a   :  { %825 = vrot.lane.b32.xlu2 %v821_v40, %s1957_s24 }
 0x37f   :  { %v902_v54 = vpop.permute.xlu0 %901  ;;  %v818_v55 = vpop.permute.xlu1 %817 }
 0x380   :  { %v906_v56 = vmul.f32 %v902_v54, %v883_v53  ;;  %v822_v57 = vmul.f32 %v818_v55, %v799_v52 }
 0x382   :  { %911 = vrot.lane.b32.xlu2 %v906_v56, %s1957_s24  ;;  %827 = vrot.lane.b32.xlu0 %v822_v57, %s1957_s24 }
 0x387   :  { %v806_v59 = vpop.permute.xlu1 %805  ;;  %v890_v61 = vpop.permute.xlu0 %889 }
 0x388   :  { %v895_v63 = vmul.f32 %v890_v61, %v2060_v5  ;;  %v811_v3 = vmul.f32 %v806_v59, %v2064_v38 }
 0x38f   :  { %v892_v60 = vpop.permute.xlu1 %891 }
 0x390   :  { %v896_v6 = vmul.f32 %v892_v60, %v883_v53 }
 0x3bc   :  { %v910_v0 = vpop.permute.xlu1 %909 }
 0x3bd   :  { %v2071_v1 = vadd.f32 %v910_v0, %v895_v63 }
 0x3bf   :  { %1805 = vtanh.f32 %v2071_v1 }
 0x3c5   :  { %v1806_v2 = vpop.eup %1805 }
 0x3c6   :  { %921 = vrot.lane.b32.xlu2 %v1806_v2, %s1959_s27 }
 0x3d4   :  { %v826_v62 = vpop.permute.xlu2 %825 }
 0x3d5   :  { %v2076_v4 = vadd.f32 %v826_v62, %v811_v3 }
 0x3d7   :  { %1807 = vtanh.f32 %v2076_v4 }
 0x3dc   :  { %v912_v7 = vpop.permute.xlu2 %911 }
 0x3dd   :  { %v1808_v8 = vpop.eup %1807  ;;  %v2079_v9 = vadd.f32 %v912_v7, %v896_v6 }
 0x3de   :  { %837 = vrot.lane.b32.xlu0 %v1808_v8, %s1959_s27 }
 0x3df   :  { %1809 = vtanh.f32 %v2079_v9 }
 0x3e5   :  { %v1810_v11 = vpop.eup %1809 }
 0x3e6   :  { %923 = vrot.lane.b32.xlu0 %v1810_v11, %s1959_s27 }
 0x3f4   :  { %v828_v14 = vpop.permute.xlu0 %827 }
 0x3f5   :  { %v2084_v15 = vadd.f32 %v828_v14, %v812_v12 }
 0x3f7   :  { %1811 = vtanh.f32 %v2084_v15 }
 0x3fd   :  { %v1812_v16 = vpop.eup %1811 }
 0x3fe   :  { %839 = vrot.lane.b32.xlu1 %v1812_v16, %s1959_s27 }
 0x420   :  { %v922_v18 = vpop.permute.xlu2 %921 }
 0x421   :  { %v927_v20 = vmul.f32 %v922_v18, %v2060_v5 }
 0x450   :  { %v838_v17 = vpop.permute.xlu0 %837 }
 0x451   :  { %v843_v24 = vmul.f32 %v838_v17, %v2064_v38 }
 0x458   :  { %v924_v19 = vpop.permute.xlu0 %923 }
 0x459   :  { %v928_v21 = vmul.f32 %v924_v19, %v883_v53 }
 0x45b   :  { %v950_v22 = vpack.c.bf16 %v928_v21, %v927_v20 }
 0x45d   :  { %952 = vrot.lane.b32.xlu2 %v950_v22, %s1957_s24 }
 0x470   :  { %v840_v23 = vpop.permute.xlu1 %839 }
 0x471   :  { %v844_v25 = vmul.f32 %v840_v23, %v799_v52 }
 0x473   :  { %v929_v26 = vpack.c.bf16 %v844_v25, %v843_v24 }
 0x475   :  { %931 = vrot.lane.b32.xlu1 %v929_v26, %s1957_s24 }
 0x4b7   :  { %v953_v27 = vpop.permute.xlu2 %952 }
 0x4b8   :  { %1657 = vmatmul.msk.bf16.vlgmr.msra.gmra.mxu3 %vm710_vm3, %v953_v27 }
 0x4e7   :  { %v932_v28 = vpop.permute.xlu1 %931 }
 0x4e8   :  { %1656 = vmatmul.msk.bf16.vlgmr.msra.gmra.mxu2 %vm710_vm3, %v932_v28 }
 0x53b   :  { %v966_v29 = vpop.f32.mrf.mxu3 }
 0x53c   :  { %v1047_v5 = vadd.f32 %v966_v29, %v2007_v10 }
 0x53e   :  { %1813 = vtanh.f32 %v1047_v5  ;;  %v1660_v38 = vmul.f32 -1.442695, %v1047_v5 }
 0x543   :  { %v968_v35 = vpop.f32.mrf.mxu3 }
 0x544   :  { %v1814_v30 = vpop.eup %1813  ;;  %v1048_v39 = vadd.f32 %v968_v35, %v2010_v13 }
 0x545   :  { %1093 = vrot.lane.b32.xlu2 %v1814_v30, %s1959_s27 }
 0x546   :  { %v1661_v59 = vmul.f32 -1.442695, %v1048_v39 }
 0x56b   :  { %v945_v33 = vpop.f32.mrf.mxu2 }
 0x56c   :  { %v971_v34 = vadd.f32 %v945_v33, %v2045_v42 }
 0x56e   :  { %1815 = vtanh.f32 %v971_v34  ;;  %v1658_v57 = vmul.f32 -1.442695, %v971_v34 }
 0x56f   :  { %1817 = vpow2.f32 %v1660_v38 }
 0x570   :  { %1819 = vtanh.f32 %v1048_v39 }
 0x573   :  { %v947_v40 = vpop.f32.mrf.mxu2 }
 0x574   :  { %v1816_v41 = vpop.eup %1815  ;;  %v972_v10 = vadd.f32 %v947_v40, %v2048_v44 }
 0x575   :  { %1017 = vrot.lane.b32.xlu0 %v1816_v41, %s1959_s27  ;;  %v1818_v43 = vpop.eup %1817 }
 0x576   :  { %1821 = vtanh.f32 %v972_v10  ;;  %v1820_v45 = vpop.eup %1819  ;;  %v1055_v42 = vadd.f32 1.0, %v1818_v43  ;;  %v1659_v60 = vmul.f32 -1.442695, %v972_v10 }
 0x578   :  { %1823 = vrcp.f32 %v1055_v42  ;;  %v1068_v44 = vand.u32 2147483648, %v1055_v42  ;;  %vm1062_vm6 = vweird.f32 %v1055_v42  ;;  %v1066_v51 = vand.u32 2147483647, %v1055_v42 }
 0x579   :  { %1825 = vpow2.f32 %v1658_v57 }
 0x57a   :  { %v1069_v53 = vor.u32 1.1754944e-38, %v1068_v44  ;;  %vm1067_vm8 = vcmp.eq.f32.partialorder %v1066_v51, 8.507059e+37  ;;  %1827 = vpow2.f32 %v1661_v59 }
 0x57b   :  { %1829 = vpow2.f32 %v1659_v60 }
 0x57c   :  { %v1822_v46 = vpop.eup %1821 }
 0x57d   :  { %1095 = vrot.lane.b32.xlu0 %v1820_v45, %s1959_s27  ;;  %1019 = vrot.lane.b32.xlu1 %v1822_v46, %s1959_s27 }
 0x57e   :  { %v1824_v47 = vpop.eup %1823 }
 0x57f   :  { %v1058_v13 = vmul.f32 %v1824_v47, %v1055_v42  ;;  %vm1063_vm5 = vweird.f32 %v1824_v47  ;;  %v1826_v61 = vpop.eup %1825 }
 0x580   :  { %vm1064_vm7 = vmor %vm1062_vm6, %vm1063_vm5  ;;  %v979_v63 = vadd.f32 1.0, %v1826_v61  ;;  %v1828_v0 = vpop.eup %1827 }
 0x581   :  { %v1059_v48 = vsub.f32 1.0, %v1058_v13  ;;  %v1830_v2 = vpop.eup %1829  ;;  %v1056_v58 = vadd.f32 1.0, %v1828_v0 }
 0x582   :  { %1831 = vrcp.f32 %v979_v63  ;;  %v980_v3 = vadd.f32 1.0, %v1830_v2  ;;  %v992_v20 = vand.u32 2147483648, %v979_v63  ;;  %vm986_vm10 = vweird.f32 %v979_v63 }
 0x583   :  { %v1060_v49 = vmul.f32 %v1824_v47, %v1059_v48  ;;  %1833 = vrcp.f32 %v1056_v58  ;;  %v990_v21 = vand.u32 2147483647, %v979_v63  ;;  %vm1077_vm15 = vweird.f32 %v1056_v58 }
 0x584   :  { %1835 = vrcp.f32 %v980_v3  ;;  %v993_v25 = vor.u32 1.1754944e-38, %v992_v20  ;;  %v1083_v30 = vand.u32 2147483648, %v1056_v58  ;;  %v1007_v33 = vand.u32 2147483648, %v980_v3 }
 0x585   :  { %v1061_v50 = vadd.f32 %v1824_v47, %v1060_v49  ;;  %vm991_vm12 = vcmp.eq.f32.partialorder %v990_v21, 8.507059e+37  ;;  %v1081_v34 = vand.u32 2147483647, %v1056_v58  ;;  %vm1001_vm1 = vweird.f32 %v980_v3 }
 0x586   :  { %v1005_v35 = vand.u32 2147483647, %v980_v3  ;;  %v1084_v40 = vor.u32 1.1754944e-38, %v1083_v30  ;;  %v1008_v41 = vor.u32 1.1754944e-38, %v1007_v33 }
 0x587   :  { %v1065_v52 = vsel %vm1064_vm7, %v1824_v47, %v1061_v50  ;;  %vm1082_vm4 = vcmp.eq.f32.partialorder %v1081_v34, 8.507059e+37 }
 0x588   :  { %v2106_v55 = vsel %vm1067_vm8, %v1069_v53, %v1065_v52  ;;  %v1832_v62 = vpop.eup %1831  ;;  %vm1006_vm5 = vcmp.eq.f32.partialorder %v1005_v35, 8.507059e+37 }
 0x589   :  { %v982_v6 = vmul.f32 %v1832_v62, %v979_v63  ;;  %v1834_v7 = vpop.eup %1833  ;;  %vm987_vm9 = vweird.f32 %v1832_v62  ;;  %v1089_v13 = vmul.f32 %v2106_v55, %v2071_v1 }
 0x58a   :  { %v1836_v11 = vpop.eup %1835  ;;  %v1073_v14 = vmul.f32 %v1834_v7, %v1056_v58  ;;  %vm988_vm11 = vmor %vm986_vm10, %vm987_vm9  ;;  %vm1078_vm13 = vweird.f32 %v1834_v7 }
 0x58b   :  { %v983_v8 = vsub.f32 1.0, %v982_v6  ;;  %v997_v16 = vmul.f32 %v1836_v11, %v980_v3  ;;  %vm1002_vm14 = vweird.f32 %v1836_v11  ;;  %vm1079_vm0 = vmor %vm1077_vm15, %vm1078_vm13 }
 0x58c   :  { %v1074_v18 = vsub.f32 1.0, %v1073_v14  ;;  %vm1003_vm2 = vmor %vm1001_vm1, %vm1002_vm14 }
 0x58d   :  { %v984_v12 = vmul.f32 %v1832_v62, %v983_v8  ;;  %v998_v19 = vsub.f32 1.0, %v997_v16 }
 0x58e   :  { %v1075_v23 = vmul.f32 %v1834_v7, %v1074_v18 }
 0x58f   :  { %v985_v17 = vadd.f32 %v1832_v62, %v984_v12  ;;  %v999_v24 = vmul.f32 %v1836_v11, %v998_v19 }
 0x590   :  { %v1076_v29 = vadd.f32 %v1834_v7, %v1075_v23 }
 0x591   :  { %v989_v22 = vsel %vm988_vm11, %v1832_v62, %v985_v17  ;;  %v1000_v5 = vadd.f32 %v1836_v11, %v999_v24 }
 0x592   :  { %v994_v27 = vsel %vm991_vm12, %v993_v25, %v989_v22  ;;  %v1080_v38 = vsel %vm1079_vm0, %v1834_v7, %v1076_v29 }
 0x593   :  { %v1004_v39 = vsel %vm1003_vm2, %v1836_v11, %v1000_v5  ;;  %v1085_v10 = vsel %vm1082_vm4, %v1084_v40, %v1080_v38  ;;  %v1013_v1 = vmul.f32 %v994_v27, %v2076_v4 }
 0x594   :  { %v1009_v46 = vsel %vm1006_vm5, %v1008_v41, %v1004_v39  ;;  %v1090_v57 = vmul.f32 %v1085_v10, %v2079_v9 }
 0x595   :  { %v1014_v44 = vmul.f32 %v1009_v46, %v2084_v15 }
 0x59f   :  { %v1094_v54 = vpop.permute.xlu2 %1093 }
 0x5a0   :  { %v1099_v56 = vmul.f32 %v1094_v54, %v2106_v55 }
 0x5a2   :  { %1103 = vrot.lane.b32.xlu0 %v1099_v56, %s1957_s24 }
 0x5e7   :  { %v1018_v26 = vpop.permute.xlu0 %1017 }
 0x5e8   :  { %v1023_v28 = vmul.f32 %v1018_v26, %v994_v27 }
 0x5ea   :  { %1027 = vrot.lane.b32.xlu1 %v1023_v28, %s1957_s24 }
 0x5ef   :  { %v1096_v43 = vpop.permute.xlu0 %1095  ;;  %v1020_v45 = vpop.permute.xlu1 %1019 }
 0x5f0   :  { %v1100_v42 = vmul.f32 %v1096_v43, %v1085_v10  ;;  %v1024_v47 = vmul.f32 %v1020_v45, %v1009_v46 }
 0x5f2   :  { %1105 = vrot.lane.b32.xlu1 %v1100_v42, %s1957_s24  ;;  %1029 = vrot.lane.b32.xlu2 %v1024_v47, %s1957_s24 }
 0x614   :  { %v1104_v48 = vpop.permute.xlu0 %1103 }
 0x615   :  { %v2115_v49 = vadd.f32 %v1104_v48, %v1089_v13 }
 0x617   :  { %1837 = vtanh.f32 %v2115_v49 }
 0x61d   :  { %v1838_v50 = vpop.eup %1837 }
 0x61e   :  { %1115 = vrot.lane.b32.xlu1 %v1838_v50, %s1959_s27 }
 0x64c   :  { %v1030_v51 = vpop.permute.xlu2 %1029 }
 0x64d   :  { %v2120_v52 = vadd.f32 %v1030_v51, %v1014_v44 }
 0x64f   :  { %1839 = vtanh.f32 %v2120_v52 }
 0x655   :  { %v1840_v53 = vpop.eup %1839 }
 0x656   :  { %1041 = vrot.lane.b32.xlu0 %v1840_v53, %s1959_s27 }
 0x65c   :  { %v1028_v54 = vpop.permute.xlu1 %1027 }
 0x65d   :  { %v2125_v56 = vadd.f32 %v1028_v54, %v1013_v1 }
 0x65f   :  { %1841 = vtanh.f32 %v2125_v56 }
 0x664   :  { %v1106_v59 = vpop.permute.xlu1 %1105 }
 0x665   :  { %v1842_v60 = vpop.eup %1841  ;;  %v2129_v15 = vadd.f32 %v1106_v59, %v1090_v57 }
 0x666   :  { %1039 = vrot.lane.b32.xlu2 %v1842_v60, %s1959_s27 }
 0x667   :  { %1843 = vtanh.f32 %v2129_v15 }
 0x66d   :  { %v1844_v61 = vpop.eup %1843 }
 0x66e   :  { %1117 = vrot.lane.b32.xlu2 %v1844_v61, %s1959_s27 }
 0x690   :  { %v1116_v4 = vpop.permute.xlu1 %1115 }
 0x691   :  { %v1121_v58 = vmul.f32 %v1116_v4, %v2106_v55 }
 0x6c0   :  { %v1040_v63 = vpop.permute.xlu2 %1039 }
 0x6c1   :  { %v1045_v3 = vmul.f32 %v1040_v63, %v994_v27 }
 0x6c8   :  { %v1118_v0 = vpop.permute.xlu2 %1117  ;;  %v1042_v2 = vpop.permute.xlu0 %1041 }
 0x6c9   :  { %v1122_v62 = vmul.f32 %v1118_v0, %v1085_v10  ;;  %v1046_v9 = vmul.f32 %v1042_v2, %v1009_v46 }
 0x6cb   :  { %v1144_v6 = vpack.c.bf16 %v1122_v62, %v1121_v58  ;;  %v1123_v7 = vpack.c.bf16 %v1046_v9, %v1045_v3 }
 0x6cd   :  { %1146 = vrot.lane.b32.xlu1 %v1144_v6, %s1957_s24  ;;  %1125 = vrot.lane.b32.xlu0 %v1123_v7, %s1957_s24 }
 0x73f   :  { %v1147_v8 = vpop.permute.xlu1 %1146  ;;  %v1126_v11 = vpop.permute.xlu0 %1125 }
 0x740   :  { %1662 = vmatmul.msk.bf16.vlgmr.msrb.gmra.mxu0 %vm710_vm3, %v1126_v11  ;;  %1663 = vmatmul.msk.bf16.vlgmr.msrb.gmra.mxu1 %vm710_vm3, %v1147_v8 }
 0x7bd   :  { %v1139_v12 = vpop.f32.mrf.mxu0  ;;  %v1160_v14 = vpop.f32.mrf.mxu1 }
 0x7be   :  { %v1165_v16 = vadd.f32 %v1139_v12, %v2096_v31  ;;  %v1241_v55 = vadd.f32 %v1160_v14, %v2041_v36 }
 0x7c0   :  { %1845 = vtanh.f32 %v1165_v16  ;;  %v1664_v36 = vmul.f32 -1.442695, %v1165_v16  ;;  %v1666_v28 = vmul.f32 -1.442695, %v1241_v55 }
 0x7c1   :  { %1847 = vtanh.f32 %v1241_v55 }
 0x7c5   :  { %v1141_v17 = vpop.f32.mrf.mxu0  ;;  %v1162_v18 = vpop.f32.mrf.mxu1 }
 0x7c6   :  { %v1846_v19 = vpop.eup %1845  ;;  %v1166_v20 = vadd.f32 %v1141_v17, %v2098_v32  ;;  %v1242_v21 = vadd.f32 %v1162_v18, %v2043_v37 }
 0x7c7   :  { %v1848_v22 = vpop.eup %1847  ;;  %1211 = vrot.lane.b32.xlu2 %v1846_v19, %s1959_s27 }
 0x7c8   :  { %1849 = vtanh.f32 %v1166_v20  ;;  %1287 = vrot.lane.b32.xlu1 %v1848_v22, %s1959_s27  ;;  %v1667_v24 = vmul.f32 -1.442695, %v1242_v21  ;;  %v1665_v33 = vmul.f32 -1.442695, %v1166_v20 }
 0x7c9   :  { %1851 = vtanh.f32 %v1242_v21 }
 0x7ca   :  { %1853 = vpow2.f32 %v1664_v36 }
 0x7cb   :  { %1855 = vpow2.f32 %v1667_v24 }
 0x7ce   :  { %v1850_v23 = vpop.eup %1849 }
 0x7cf   :  { %v1852_v31 = vpop.eup %1851  ;;  %1213 = vrot.lane.b32.xlu0 %v1850_v23, %s1959_s27 }
 0x7d0   :  { %1289 = vrot.lane.b32.xlu2 %v1852_v31, %s1959_s27  ;;  %v1854_v25 = vpop.eup %1853 }
 0x7d1   :  { %v1173_v32 = vadd.f32 1.0, %v1854_v25  ;;  %v1856_v37 = vpop.eup %1855 }
 0x7d2   :  { %v1250_v26 = vadd.f32 1.0, %v1856_v37 }
 0x7d3   :  { %1857 = vrcp.f32 %v1173_v32  ;;  %v1186_v41 = vand.u32 2147483648, %v1173_v32  ;;  %vm1180_vm7 = vweird.f32 %v1173_v32  ;;  %v1184_v43 = vand.u32 2147483647, %v1173_v32 }
 0x7d4   :  { %1859 = vrcp.f32 %v1250_v26  ;;  %v1277_v1 = vand.u32 2147483648, %v1250_v26  ;;  %vm1271_vm11 = vweird.f32 %v1250_v26  ;;  %v1275_v54 = vand.u32 2147483647, %v1250_v26 }
 0x7d5   :  { %1861 = vpow2.f32 %v1666_v28  ;;  %v1187_v42 = vor.u32 1.1754944e-38, %v1186_v41  ;;  %vm1185_vm9 = vcmp.eq.f32.partialorder %v1184_v43, 8.507059e+37 }
 0x7d6   :  { %1863 = vpow2.f32 %v1665_v33  ;;  %v1278_v60 = vor.u32 1.1754944e-38, %v1277_v1  ;;  %vm1276_vm13 = vcmp.eq.f32.partialorder %v1275_v54, 8.507059e+37 }
 0x7d9   :  { %v1858_v27 = vpop.eup %1857 }
 0x7da   :  { %v1176_v29 = vmul.f32 %v1858_v27, %v1173_v32  ;;  %v1860_v30 = vpop.eup %1859  ;;  %vm1181_vm6 = vweird.f32 %v1858_v27 }
 0x7db   :  { %v1862_v35 = vpop.eup %1861  ;;  %v1267_v38 = vmul.f32 %v1860_v30, %v1250_v26  ;;  %vm1182_vm8 = vmor %vm1180_vm7, %vm1181_vm6  ;;  %vm1272_vm10 = vweird.f32 %v1860_v30  ;;  %vm1335_vm7 = vcmask 523520  }
 0x7dc   :  { %v1177_v5 = vsub.f32 1.0, %v1176_v29  ;;  %v1249_v39 = vadd.f32 1.0, %v1862_v35  ;;  %v1864_v45 = vpop.eup %1863  ;;  %vm1273_vm12 = vmor %vm1271_vm11, %vm1272_vm10 }
 0x7dd   :  { %v1268_v10 = vsub.f32 1.0, %v1267_v38  ;;  %v1174_v13 = vadd.f32 1.0, %v1864_v45 }
 0x7de   :  { %v1178_v34 = vmul.f32 %v1858_v27, %v1177_v5  ;;  %1865 = vrcp.f32 %v1249_v39  ;;  %v1262_v6 = vand.u32 2147483648, %v1249_v39  ;;  %vm1256_vm15 = vweird.f32 %v1249_v39 }
 0x7df   :  { %v1269_v47 = vmul.f32 %v1860_v30, %v1268_v10  ;;  %1867 = vrcp.f32 %v1174_v13  ;;  %v1260_v7 = vand.u32 2147483647, %v1249_v39  ;;  %v1201_v18 = vand.u32 2147483648, %v1174_v13 }
 0x7e0   :  { %v1179_v40 = vadd.f32 %v1858_v27, %v1178_v34  ;;  %v1263_v12 = vor.u32 1.1754944e-38, %v1262_v6  ;;  %vm1195_vm4 = vweird.f32 %v1174_v13  ;;  %v1199_v19 = vand.u32 2147483647, %v1174_v13 }
 0x7e1   :  { %v1270_v51 = vadd.f32 %v1860_v30, %v1269_v47  ;;  %vm1261_vm1 = vcmp.eq.f32.partialorder %v1260_v7, 8.507059e+37  ;;  %v1202_v21 = vor.u32 1.1754944e-38, %v1201_v18 }
 0x7e2   :  { %v1183_v46 = vsel %vm1182_vm8, %v1858_v27, %v1179_v40  ;;  %vm1200_vm6 = vcmp.eq.f32.partialorder %v1199_v19, 8.507059e+37 }
 0x7e3   :  { %v2147_v50 = vsel %vm1185_vm9, %v1187_v42, %v1183_v46  ;;  %v1274_v57 = vsel %vm1273_vm12, %v1860_v30, %v1270_v51 }
 0x7e4   :  { %v1866_v53 = vpop.eup %1865  ;;  %v2151_v61 = vsel %vm1276_vm13, %v1278_v60, %v1274_v57  ;;  %v1207_v36 = vmul.f32 %v2147_v50, %v2125_v56 }
 0x7e5   :  { %v1252_v59 = vmul.f32 %v1866_v53, %v1249_v39  ;;  %v1868_v4 = vpop.eup %1867  ;;  %vm1257_vm14 = vweird.f32 %v1866_v53  ;;  %v1284_v27 = vmul.f32 %v2151_v61, %v2129_v15 }
 0x7e6   :  { %v1191_v58 = vmul.f32 %v1868_v4, %v1174_v13  ;;  %vm1258_vm0 = vmor %vm1256_vm15, %vm1257_vm14  ;;  %vm1196_vm2 = vweird.f32 %v1868_v4 }
 0x7e7   :  { %v1253_v2 = vsub.f32 1.0, %v1252_v59  ;;  %vm1197_vm5 = vmor %vm1195_vm4, %vm1196_vm2 }
 0x7e8   :  { %v1192_v62 = vsub.f32 1.0, %v1191_v58 }
 0x7e9   :  { %v1254_v3 = vmul.f32 %v1866_v53, %v1253_v2 }
 0x7ea   :  { %v1193_v8 = vmul.f32 %v1868_v4, %v1192_v62 }
 0x7eb   :  { %v1255_v9 = vadd.f32 %v1866_v53, %v1254_v3 }
 0x7ec   :  { %v1194_v55 = vadd.f32 %v1868_v4, %v1193_v8 }
 0x7ed   :  { %v1259_v11 = vsel %vm1258_vm0, %v1866_v53, %v1255_v9 }
 0x7ee   :  { %v1264_v16 = vsel %vm1261_vm1, %v1263_v12, %v1259_v11  ;;  %v1198_v20 = vsel %vm1197_vm5, %v1868_v4, %v1194_v55 }
 0x7ef   :  { %v1203_v23 = vsel %vm1200_vm6, %v1202_v21, %v1198_v20  ;;  %v1283_v24 = vmul.f32 %v1264_v16, %v2115_v49 }
 0x7f0   :  { %v1208_v49 = vmul.f32 %v1203_v23, %v2120_v52 }
 0x821   :  { %v1212_v48 = vpop.permute.xlu2 %1211 }
 0x822   :  { %v1217_v44 = vmul.f32 %v1212_v48, %v2147_v50 }
 0x824   :  { %1221 = vrot.lane.b32.xlu0 %v1217_v44, %s1957_s24 }
 0x82a   :  { %v1290_v63 = vpop.permute.xlu2 %1289 }
 0x82b   :  { %v1294_v0 = vmul.f32 %v1290_v63, %v2151_v61 }
 0x82d   :  { %1299 = vrot.lane.b32.xlu0 %v1294_v0, %s1957_s24 }
 0x83a   :  { %v1288_v14 = vpop.permute.xlu1 %1287 }
 0x83b   :  { %v1293_v17 = vmul.f32 %v1288_v14, %v1264_v16 }
 0x83d   :  { %1297 = vrot.lane.b32.xlu2 %v1293_v17, %s1957_s24 }
 0x841   :  { %v1214_v22 = vpop.permute.xlu0 %1213 }
 0x842   :  { %v1218_v31 = vmul.f32 %v1214_v22, %v1203_v23 }
 0x844   :  { %1223 = vrot.lane.b32.xlu1 %v1218_v31, %s1957_s24 }
 0x896   :  { %v1222_v25 = vpop.permute.xlu0 %1221 }
 0x897   :  { %v1298_v32 = vpop.permute.xlu2 %1297  ;;  %v1227_v37 = vadd.f32 %v1222_v25, %v1207_v36 }
 0x898   :  { %v1303_v26 = vadd.f32 %v1298_v32, %v1283_v24 }
 0x899   :  { %1869 = vtanh.f32 %v1227_v37 }
 0x89a   :  { %1871 = vtanh.f32 %v1303_v26 }
 0x89f   :  { %v1870_v28 = vpop.eup %1869  ;;  %v1300_v29 = vpop.permute.xlu0 %1299 }
 0x8a0   :  { %v1872_v5 = vpop.eup %1871  ;;  %v1304_v30 = vadd.f32 %v1300_v29, %v1284_v27  ;;  %1233 = vrot.lane.b32.xlu1 %v1870_v28, %s1959_s27 }
 0x8a1   :  { %1309 = vrot.lane.b32.xlu0 %v1872_v5, %s1959_s27 }
 0x8a2   :  { %1873 = vtanh.f32 %v1304_v30 }
 0x8a8   :  { %v1874_v56 = vpop.eup %1873 }
 0x8a9   :  { %1311 = vrot.lane.b32.xlu1 %v1874_v56, %s1959_s27 }
 0x8b6   :  { %v1224_v33 = vpop.permute.xlu1 %1223 }
 0x8b7   :  { %v1228_v34 = vadd.f32 %v1224_v33, %v1208_v49 }
 0x8b9   :  { %1875 = vtanh.f32 %v1228_v34 }
 0x8bf   :  { %v1876_v35 = vpop.eup %1875 }
 0x8c0   :  { %1235 = vrot.lane.b32.xlu2 %v1876_v35, %s1959_s27 }
 0x912   :  { %v1234_v15 = vpop.permute.xlu1 %1233 }
 0x913   :  { %v1310_v38 = vpop.permute.xlu0 %1309  ;;  %v1239_v39 = vmul.f32 %v1234_v15, %v2147_v50 }
 0x914   :  { %v1315_v40 = vmul.f32 %v1310_v38, %v1264_v16 }
 0x915   :  { %1319 = vrot.lane.b32.xlu2 %v1239_v39, %s1957_s24 }
 0x916   :  { %1329 = vrot.lane.b32.xlu1 %v1315_v40, %s1959_s27 }
 0x91a   :  { %v1236_v41 = vpop.permute.xlu2 %1235 }
 0x91b   :  { %v1312_v10 = vpop.permute.xlu1 %1311  ;;  %v1240_v43 = vmul.f32 %v1236_v41, %v1203_v23 }
 0x91c   :  { %v1316_v52 = vmul.f32 %v1312_v10, %v2151_v61 }
 0x91d   :  { %1321 = vrot.lane.b32.xlu0 %v1240_v43, %s1957_s24 }
 0x91e   :  { %1331 = vrot.lane.b32.xlu2 %v1316_v52, %s1959_s27 }
 0x96f   :  { %v1320_v45 = vpop.permute.xlu2 %1319 }
 0x970   :  { %1325 = vst.msk [vmem:[#allocation7] sm:$0xff] %vm710_vm3, %v1320_v45 }
 0x978   :  { %v1332_v47 = vpop.permute.xlu2 %1331 }
 0x988   :  { %v1330_v46 = vpop.permute.xlu1 %1329 }
 0x989   :  { %1336 = vst.msk [vmem:[#allocation7] sm:$0xff] %vm1335_vm7, %v1330_v46 }
 0x98f   :  { %v1322_v42 = vpop.permute.xlu0 %1321 }
 0x990   :  { %1326 = vst.msk [vmem:[#allocation7 + $0x8] sm:$0xff] %vm710_vm3, %v1322_v42 }
 0x991   :  { %1337 = vst.msk [vmem:[#allocation7 + $0x8] sm:$0xff] %vm1335_vm7, %v1332_v47 }
 0x992   :  { %1350 = dma.vmem_to_hbm [thread:$0]  %s1343_s9, 256, %s1345_s12, [#allocation4], %s1965_s13, %s1965_s13, %s1966_s14  }
 0x993   :  { %1953 = dma.done.wait [#allocation4], 256  }
 0x994   :  { %1954 = vsyncadd [#allocation4], 4294967040 }
 0x995   :  { %1355 = vsyncpa [#allocation3], 1 }
 0x996   :  { %1356 = vsyncpa [#allocation6], 1 }
 0x997   :  { %1357 = vsyncpa [#allocation4], 1 }

</bundles_post_ra>
